<compile_context>
chip_gen: v7x
topology: tpu7x:2x2x1
jax: 0.10.0
libtpu: 0.0.40
codegen_flags: <defaults>
</compile_context>

<pallas_src>
import jax
import jax.numpy as jnp
from jax.experimental import pallas as pl
from jax.experimental.pallas import tpu as pltpu

# TODO(synk): the 'cn_t' backbone from get_model() is external and not defined
# in the module source; it is not translated here. The kernel consumes its
# output feature map [B, C_feat, H, W].


def _head_kernel(x_ref, w1_ref, b1_ref, w2_ref, b2_ref, o_ref):
    # x_ref: [Bt, C, HW] (bf16). 1/HW and BatchNorm are pre-folded into w1/b1,
    # so the pool is a pure spatial sum accumulated in f32.
    pooled = jnp.sum(x_ref[...].astype(jnp.float32), axis=-1)        # [Bt, C]

    # Linear(C -> 128) with BN + 1/HW folded in.
    h = jnp.dot(pooled, w1_ref[...],
                preferred_element_type=jnp.float32) + b1_ref[...]    # [Bt, 128]

    # Dropout(0.1): identity in eval mode.  ReLU:
    h = jnp.maximum(h, jnp.float32(0.0))

    # Linear(128 -> num_classes), padded to 128 lanes for dense stores.
    o_ref[...] = (jnp.dot(h, w2_ref[...],
                          preferred_element_type=jnp.float32) + b2_ref[...])


def _pick_batch_block(B, C, HW, itemsize, budget_bytes=8 << 20, max_rows=256):
    """Largest multiple-of-8 batch block whose double-buffered feature-map
    tile stays under `budget_bytes` (and does not exceed the padded batch)."""
    per_row = max(1, C * HW * itemsize)
    fit = max(8, (budget_bytes // (2 * per_row)) // 8 * 8)
    b_round = ((B + 7) // 8) * 8
    return int(min(fit, max_rows, b_round))


def fold_params(params, hw, eps=1e-5, lane=128):
    """Fold eval-mode BatchNorm and the 1/HW pool divisor into Linear1;
    pad the classifier output dimension to a lane-dense multiple of 128."""
    w1, b1, gamma, beta, rmean, rvar, w2, b2 = params
    bn_scale = gamma * jax.lax.rsqrt(rvar + jnp.float32(eps))        # [1, hidden]
    w1f = (w1 * (1.0 / hw)) * bn_scale                               # [C, hidden]
    b1f = (b1 - rmean) * bn_scale + beta                             # [1, hidden]
    nc = w2.shape[1]
    ncp = ((nc + lane - 1) // lane) * lane
    w2p = jnp.pad(w2, ((0, 0), (0, ncp - nc)))
    b2p = jnp.pad(b2, ((0, 0), (0, ncp - nc)))
    return (w1f, b1f, w2p, b2p, nc)


def model_head(feat_nchw, folded_params, *, block_rows=None):
    """feat_nchw: [B, C, H, W] backbone output (bf16 or f32, NCHW).
    Returns logits [B, num_classes] in f32."""
    B, C, H, W = feat_nchw.shape
    HW = H * W
    # Contiguous reshape only -- no transpose, no extra HBM round trip.
    x = feat_nchw.reshape(B, C, HW)

    w1, b1, w2, b2, num_classes = folded_params
    hidden = w1.shape[1]
    ncp = w2.shape[1]

    bt = (block_rows if block_rows is not None
          else _pick_batch_block(B, C, HW, x.dtype.itemsize))
    bt = max(8, (bt // 8) * 8)
    # Pad the batch so the grid divides evenly (zero rows are sliced off below).
    Bp = ((B + bt - 1) // bt) * bt
    if Bp != B:
        x = jnp.pad(x, ((0, Bp - B), (0, 0), (0, 0)))
    grid = (Bp // bt,)

    out_padded = pl.pallas_call(
        _head_kernel,
        out_shape=jax.ShapeDtypeStruct((Bp, ncp), jnp.float32),
        grid=grid,
        in_specs=[
            pl.BlockSpec((bt, C, HW), lambda b: (b, 0, 0)),   # streamed feature map
            pl.BlockSpec((C, hidden), lambda b: (0, 0)),      # resident weights
            pl.BlockSpec((1, hidden), lambda b: (0, 0)),
            pl.BlockSpec((hidden, ncp), lambda b: (0, 0)),
            pl.BlockSpec((1, ncp), lambda b: (0, 0)),
        ],
        out_specs=pl.BlockSpec((bt, ncp), lambda b: (b, 0)),
        compiler_params=pltpu.CompilerParams(
            dimension_semantics=("parallel",),
            vmem_limit_bytes=32 * 1024 * 1024,
        ),
    )(x, w1, b1, w2, b2)
    return out_padded[:B, :num_classes]


def make_params(key, in_features, hidden, num_classes):
    k1, k2, k3, k4 = jax.random.split(key, 4)
    # Linear(in_features, 128): torch weight is [out, in]; stored transposed [in, out].
    w1 = (jax.random.normal(k1, (in_features, hidden), jnp.float32)
          * (1.0 / jnp.sqrt(in_features)))
    b1 = (jax.random.normal(k2, (1, hidden), jnp.float32)
          * (1.0 / jnp.sqrt(in_features)))
    # BatchNorm1d(128) parameters / running stats (default init).
    gamma = jnp.ones((1, hidden), jnp.float32)
    beta = jnp.zeros((1, hidden), jnp.float32)
    rmean = jnp.zeros((1, hidden), jnp.float32)
    rvar = jnp.ones((1, hidden), jnp.float32)
    # Linear(128, num_classes), stored transposed [128, num_classes].
    w2 = (jax.random.normal(k3, (hidden, num_classes), jnp.float32)
          * (1.0 / jnp.sqrt(hidden)))
    b2 = (jax.random.normal(k4, (1, num_classes), jnp.float32)
          * (1.0 / jnp.sqrt(hidden)))
    return (w1, b1, gamma, beta, rmean, rvar, w2, b2)


def reference_head(feat_nchw, params, eps=1e-5):
    """Unfused eval-mode reference matching the PyTorch head."""
    w1, b1, gamma, beta, rmean, rvar, w2, b2 = params
    pooled = jnp.mean(feat_nchw, axis=(2, 3))                        # [B, C]
    h = pooled @ w1 + b1
    h = (h - rmean) * jax.lax.rsqrt(rvar + eps) * gamma + beta
    h = jnp.maximum(h, 0.0)
    return h @ w2 + b2


if __name__ == "__main__":
    # Small shapes consistent with the module's head:
    # backbone feature map [B, C_feat, H, W], hidden=128, num_classes=10.
    B, C_feat, H, W = 16, 256, 8, 8
    hidden, num_classes = 128, 10

    key = jax.random.PRNGKey(0)
    kx, kp = jax.random.split(key)
    feat = jax.random.normal(kx, (B, C_feat, H, W), jnp.float32).astype(jnp.bfloat16)
    params = make_params(kp, C_feat, hidden, num_classes)
    folded = fold_params(params, H * W)

    # block_rows=8 -> grid of 2 batch blocks (exercises the pipelined grid path).
    out = model_head(feat, folded, block_rows=8)
    out = jax.block_until_ready(out)

    # Reference consumes the same bf16-quantized features upcast to f32, so the
    # comparison isolates kernel math (fold/fusion/accumulation order) only.
    ref = jax.block_until_ready(reference_head(feat.astype(jnp.float32), params))
    assert out.shape == (B, num_classes)
    err = float(jnp.max(jnp.abs(out - ref)))
    assert jnp.allclose(out, ref, atol=2e-3, rtol=2e-3), err

    print("KERNEL_OK")
</pallas_src>

<mosaic_0001>
module attributes {stable_mosaic.version = 11 : i64} {
  func.func @_head_kernel(%arg0: i32, %arg1: memref<8x256x64xbf16, #tpu.memory_space<vmem>>, %arg2: memref<256x128xf32, #tpu.memory_space<vmem>>, %arg3: memref<1x128xf32, #tpu.memory_space<vmem>>, %arg4: memref<128x128xf32, #tpu.memory_space<vmem>>, %arg5: memref<1x128xf32, #tpu.memory_space<vmem>>, %arg6: memref<8x128xf32, #tpu.memory_space<vmem>>) attributes {dimension_semantics = [#tpu.dimension_semantics<parallel>], iteration_bounds = array<i64: 2>, scalar_prefetch = 0 : i64, scratch_operands = 0 : i64, tpu.core_type = #tpu.core_type<tc>, window_params = [{transform_indices = @transform_0, window_bounds = array<i64: 8, 256, 64>}, {pipeline_mode = #tpu.pipeline_mode<synchronous>, transform_indices = @transform_1, window_bounds = array<i64: 256, 128>}, {pipeline_mode = #tpu.pipeline_mode<synchronous>, transform_indices = @transform_2, window_bounds = array<i64: 1, 128>}, {pipeline_mode = #tpu.pipeline_mode<synchronous>, transform_indices = @transform_3, window_bounds = array<i64: 128, 128>}, {pipeline_mode = #tpu.pipeline_mode<synchronous>, transform_indices = @transform_4, window_bounds = array<i64: 1, 128>}, {transform_indices = @transform_5, window_bounds = array<i64: 8, 128>}]} {
    %c0 = arith.constant 0 : index
    %c0_0 = arith.constant 0 : index
    %c0_1 = arith.constant 0 : index
    %0 = vector.load %arg1[%c0, %c0_0, %c0_1] : memref<8x256x64xbf16, #tpu.memory_space<vmem>>, vector<8x256x64xbf16>
    %1 = arith.extf %0 : vector<8x256x64xbf16> to vector<8x256x64xf32>
    %cst = arith.constant dense<0.000000e+00> : vector<8x256xf32>
    %2 = vector.multi_reduction <add>, %1, %cst [2] : vector<8x256x64xf32> to vector<8x256xf32>
    %c0_2 = arith.constant 0 : index
    %c0_3 = arith.constant 0 : index
    %3 = vector.load %arg2[%c0_2, %c0_3] : memref<256x128xf32, #tpu.memory_space<vmem>>, vector<256x128xf32>
    %cst_4 = arith.constant dense<0.000000e+00> : vector<8x128xf32>
    %4 = tpu.matmul %2, %3, %cst_4 {dimension_numbers = #tpu.dot_dimension_numbers<[1], [0], [0], [1], [0, 0, 1, 1], [], []>} : vector<8x256xf32>, vector<256x128xf32>, vector<8x128xf32> -> vector<8x128xf32>
    %c0_5 = arith.constant 0 : index
    %c0_6 = arith.constant 0 : index
    %5 = vector.load %arg3[%c0_5, %c0_6] : memref<1x128xf32, #tpu.memory_space<vmem>>, vector<1x128xf32>
    %6 = vector.broadcast %5 : vector<1x128xf32> to vector<8x128xf32>
    %7 = arith.addf %4, %6 : vector<8x128xf32>
    %cst_7 = arith.constant 0.000000e+00 : f32
    %8 = vector.broadcast %cst_7 : f32 to vector<8x128xf32>
    %9 = arith.maximumf %7, %8 : vector<8x128xf32>
    %c0_8 = arith.constant 0 : index
    %c0_9 = arith.constant 0 : index
    %10 = vector.load %arg4[%c0_8, %c0_9] : memref<128x128xf32, #tpu.memory_space<vmem>>, vector<128x128xf32>
    %cst_10 = arith.constant dense<0.000000e+00> : vector<8x128xf32>
    %11 = tpu.matmul %9, %10, %cst_10 {dimension_numbers = #tpu.dot_dimension_numbers<[1], [0], [0], [1], [0, 0, 1, 1], [], []>} : vector<8x128xf32>, vector<128x128xf32>, vector<8x128xf32> -> vector<8x128xf32>
    %c0_11 = arith.constant 0 : index
    %c0_12 = arith.constant 0 : index
    %12 = vector.load %arg5[%c0_11, %c0_12] : memref<1x128xf32, #tpu.memory_space<vmem>>, vector<1x128xf32>
    %13 = vector.broadcast %12 : vector<1x128xf32> to vector<8x128xf32>
    %14 = arith.addf %11, %13 : vector<8x128xf32>
    %c0_13 = arith.constant 0 : index
    %c0_14 = arith.constant 0 : index
    %15 = vector.load %arg6[%c0_13, %c0_14] : memref<8x128xf32, #tpu.memory_space<vmem>>, vector<8x128xf32>
    tpu.vector_store %arg6[%c0_13, %c0_14], %14 {strides = array<i32>} : memref<8x128xf32, #tpu.memory_space<vmem>>, vector<8x128xf32>,
    return
  }
  func.func @transform_0(%arg0: i32) -> (i32, i32, i32) {
    %c0_i32 = arith.constant 0 : i32
    %c0_i32_0 = arith.constant 0 : i32
    %c0_i32_1 = arith.constant 0 : i32
    return %arg0, %c0_i32, %c0_i32_0 : i32, i32, i32
  }
  func.func @transform_1(%arg0: i32) -> (i32, i32) {
    %c0_i32 = arith.constant 0 : i32
    %c0_i32_0 = arith.constant 0 : i32
    %c0_i32_1 = arith.constant 0 : i32
    return %c0_i32, %c0_i32_0 : i32, i32
  }
  func.func @transform_2(%arg0: i32) -> (i32, i32) {
    %c0_i32 = arith.constant 0 : i32
    %c0_i32_0 = arith.constant 0 : i32
    %c0_i32_1 = arith.constant 0 : i32
    return %c0_i32, %c0_i32_0 : i32, i32
  }
  func.func @transform_3(%arg0: i32) -> (i32, i32) {
    %c0_i32 = arith.constant 0 : i32
    %c0_i32_0 = arith.constant 0 : i32
    %c0_i32_1 = arith.constant 0 : i32
    return %c0_i32, %c0_i32_0 : i32, i32
  }
  func.func @transform_4(%arg0: i32) -> (i32, i32) {
    %c0_i32 = arith.constant 0 : i32
    %c0_i32_0 = arith.constant 0 : i32
    %c0_i32_1 = arith.constant 0 : i32
    return %c0_i32, %c0_i32_0 : i32, i32
  }
  func.func @transform_5(%arg0: i32) -> (i32, i32) {
    %c0_i32 = arith.constant 0 : i32
    %c0_i32_0 = arith.constant 0 : i32
    return %arg0, %c0_i32 : i32, i32
  }
}

</mosaic_0001>

<bundles_post_ra>
// kernel: tpu_custom_call.1
= control target key start
LH: loop header
LB: loop body
LE: loop exit
PB: predicated region body
PF: predicated region fallthrough
CT: control target
= control target key end

     0   :  { %10 = vsyncpa [#allocation3], 0  ;;  %s6415_s0 = inlined_call_operand.vmem [shape: bf16[16,256,64], index: 0, kind: input, shape index: {}]   ;;  %s6416_s1 = inlined_call_operand.vmem [shape: f32[256,128], index: 1, kind: input, shape index: {}]   ;;  %s6417_s2 = inlined_call_operand.vmem [shape: f32[1,128], index: 2, kind: input, shape index: {}]   ;;  %s6418_s3 = inlined_call_operand.vmem [shape: f32[128,128], index: 3, kind: input, shape index: {}]   ;;  %s6419_s4 = inlined_call_operand.vmem [shape: f32[1,128], index: 4, kind: input, shape index: {}]   ;;  %s6420_s5 = inlined_call_operand.hbm [shape: f32[16,128], index: 5, kind: output, shape index: {}]  }
   0x1   :  { %12 = vsyncpa [#allocation3 + $0x1], 0  ;;  %s4298_s18 = smov 0   ;;  %s4300_s19 = smov 0  }
   0x2   :  { %s4302_s20 = smov 0   ;;  %s4304_s21 = smov 0  }
   0x3 LB: > { %s4319_s22 = sadd.s32 4294967295, %s4262_s21   ;;  %s3361_s23 = sadd.s32 4294967294, %s4262_s21   ;;  %s4262_s21 = sphi %s4304_s21, %s6426_s21   ;;  %s4258_s20 = sphi %s4302_s20, %s6425_s20   ;;  %s4254_s19 = sphi %s4300_s19, %s6424_s19   ;;  %s4250_s18 = sphi %s4298_s18, %s6423_s18  }
   0x4   : > { %s4323_s24 = sadd.s32 1, %s4262_s21   ;;  %s135_s25 = sadd.s32 1, %s4258_s20 }
   0x5   : > { %s132_s26 = ssub.s32 %s4262_s21, %s4323_s24  ;;  %p145_p0 = scmp.ne.s32.totalorder %s4258_s20, %s4254_s19 }
   0x6   : > { %p133_p1 = scmp.eq.s32.totalorder %s132_s26, 0  ;;  %p146_p2 = scmp.eq.s32.totalorder %s4319_s22, 1 }
   0x7   : > { %p151_p3 = scmp.ne.s32.totalorder %s4254_s19, %s4250_s18  ;;  %p152_p4 = scmp.eq.s32.totalorder %s3361_s23, 1 }
   0x8   : > { %s4334_s27 = scalar_select %p133_p1, %s4258_s20, %s135_s25  }
   0x9   : > { %p4336_p5 = por %p146_p2, %p145_p0  ;;  %p4340_p6 = por %p152_p4, %p151_p3 }
   0xa   : > { %p3364_p7 = scmp.ge.s32.totalorder %s4262_s21, 1  ;;  %p192_p8 = scmp.lt.s32.totalorder %s4262_s21, 3 }
   0xc   : > { %p193_p9 = pnand %p3364_p7, %p192_p8 }
   0xd   : > { %s3366_s30 = sshll.u32 (!%p193_p9), %s4319_s22, 3  ;;  %vm740_vm0 = vcmask (!%p193_p9), 523264   ;;  %vm1815_vm1 = vcmask (!%p193_p9), 130112   ;;  %vm1822_vm2 = vcmask (!%p193_p9), 195712   ;;  %vm1829_vm3 = vcmask (!%p193_p9), 261312   ;;  %s218_s12 = sand.u32 (!%p193_p9), 1, %s4254_s19  }
   0xe   : > { %196 = sbr.rel (%p193_p9) target bundleno = 1131 (0x46b), region = 40  ;;  %p222_p10 = scmp.lt.s32.totalorder (!%p193_p9), %s3366_s30, 15  ;;  %vm1836_vm4 = vcmask (!%p193_p9), 326912   ;;  %vm1843_vm5 = vcmask (!%p193_p9), 392512   ;;  %vm1850_vm6 = vcmask (!%p193_p9), 458112   ;;  %vm1857_vm7 = vcmask (!%p193_p9), 523712  }
   0xf   : > { %vm1864_vm8 = vcmask (!%p193_p9), 589312   ;;  %vm1871_vm9 = vcmask (!%p193_p9), 654912   ;;  %vm1878_vm10 = vcmask (!%p193_p9), 720512   ;;  %vm1885_vm11 = vcmask (!%p193_p9), 786112   ;;  %s3365_s13 = sshll.u32 (!%p193_p9), %s218_s12, 3  ;;  %s3372_s16 = sshll.u32 (!%p193_p9), %s4319_s22, 7 }
  0x10   : > { %vm1892_vm12 = vcmask (!%p193_p9), 851712   ;;  %vm1899_vm13 = vcmask (!%p193_p9), 917312   ;;  %vm1906_vm14 = vcmask (!%p193_p9), 982912   ;;  %vm1913_vm15 = vcmask (!%p193_p9), 1048512   ;;  %s220_s17 = scalar_lea.vmem (!%p193_p9), [#allocation2], %s3365_s13  ;;  %s4267_s22 = smov (!%p193_p9), [#allocation2]  }
  0x11   : > { %s3302_s23 = sshll.u32 (!%p193_p9), %s220_s17, 4  ;;  %s4204_s8 = sshll.u32 (!%p193_p9), %s4267_s22, 4  ;;  %s6375_s23 = int_to_ptr.vmem [resolvable:$true] %s3302_s23  ;;  %s4205_s8 = int_to_ptr.vmem [resolvable:$false] %s4204_s8 }
  0x12   : > { %s4200_s7 = scalar_lea.vmem (!%p193_p9), %s6375_s23, 128  ;;  %p4207_p0 = scmp.lt.s32.totalorder (!%p193_p9), %s6375_s23, %s4205_s8 }
  0x13   : > { %p4201_p11 = scmp.ne.s32.totalorder (!%p193_p9), %s6375_s23, %s4200_s7 }
  0x15   : > { %s6428_s30 = smov (!%p222_p10, %s3366_s30), 15  ;;  %p4202_p12 = pnand %p4201_p11, %p4336_p5 }
  0x16   : > { %s3375_s6 = sshll.u32 %s6428_s30, 7  ;;  %s6373_s30 = scalar_lea.hbm %s6420_s5, %s3372_s16 }
  0x17   : > { %s4350_s9 = scalar_lea.vmem %s6415_s0, %s3375_s6  ;;  %s3289_s6 = scalar_lea.sflag [#allocation3], %s218_s12 }
  0x18   : > { %v3911_v0 = vld [vmem:[%s4350_s9 + $0xc0] sm:$0xff]   ;;  %v3896_v14 = vld [vmem:[%s4350_s9 + $0x48] sm:$0xff]   ;;  %v3897_v54 = vld [vmem:[%s4350_s9 + $0x50] sm:$0xff]   ;;  %p4203_p13 = pneg %p4202_p12 }
  0x19   : > { %v3895_v1 = vld [vmem:[%s4350_s9 + $0x40] sm:$0xff]   ;;  %v3474_v2 = vunpack.c.l.bf16 %v3911_v0  ;;  %v3475_v4 = vunpack.c.h.bf16 %v3911_v0  ;;  %v3414_v18 = vunpack.c.l.bf16 %v3896_v14  ;;  %v3912_v19 = vld [vmem:[%s4350_s9 + $0xc8] sm:$0xff]   ;;  %v3415_v32 = vunpack.c.h.bf16 %v3896_v14  ;;  %v3913_v60 = vld [vmem:[%s4350_s9 + $0xd0] sm:$0xff]  }
  0x1a   : > { %v3410_v3 = vunpack.c.l.bf16 %v3895_v1  ;;  %v3411_v5 = vunpack.c.h.bf16 %v3895_v1  ;;  %v3377_v6 = vld [vmem:[%s4350_s9] sm:$0xff]   ;;  %v3478_v22 = vunpack.c.l.bf16 %v3912_v19  ;;  %v3888_v29 = vld [vmem:[%s4350_s9 + $0x8] sm:$0xff]   ;;  %v3479_v37 = vunpack.c.h.bf16 %v3912_v19 }
  0x1b   : > { %v885_v7 = vsel %vm740_vm0, %v3474_v2, 0.0  ;;  %v888_v9 = vsel %vm740_vm0, %v3475_v4, 0.0  ;;  %v3379_v11 = vunpack.c.h.bf16 %v3377_v6  ;;  %v3378_v12 = vunpack.c.l.bf16 %v3377_v6  ;;  %v3903_v13 = vld [vmem:[%s4350_s9 + $0x80] sm:$0xff]   ;;  %v3904_v34 = vld [vmem:[%s4350_s9 + $0x88] sm:$0xff]  }
  0x1c   : > { %v789_v8 = vsel %vm740_vm0, %v3410_v3, 0.0  ;;  %886 = vadd.xlane.f32.xlu1 %v885_v7  ;;  %v792_v10 = vsel %vm740_vm0, %v3411_v5, 0.0  ;;  %v3442_v17 = vunpack.c.l.bf16 %v3903_v13  ;;  %v795_v21 = vsel %vm740_vm0, %v3414_v18, 0.0  ;;  %v3927_v24 = vld [vmem:[%s4350_s9 + $0x140] sm:$0xff]   ;;  %v3928_v45 = vld [vmem:[%s4350_s9 + $0x148] sm:$0xff]  }
  0x1d   : > { %790 = vadd.xlane.f32.xlu0 %v789_v8  ;;  %v744_v15 = vsel %vm740_vm0, %v3379_v11, 0.0  ;;  %v741_v16 = vsel %vm740_vm0, %v3378_v12, 0.0  ;;  %v3443_v23 = vunpack.c.h.bf16 %v3903_v13  ;;  %v891_v25 = vsel %vm740_vm0, %v3478_v22, 0.0  ;;  %v3919_v39 = vld [vmem:[%s4350_s9 + $0x100] sm:$0xff]   ;;  %v3920_v59 = vld [vmem:[%s4350_s9 + $0x108] sm:$0xff]  }
  0x1e   : > { %v837_v20 = vsel %vm740_vm0, %v3442_v17, 0.0  ;;  %v3539_v27 = vunpack.c.h.bf16 %v3927_v24  ;;  %v3538_v28 = vunpack.c.l.bf16 %v3927_v24  ;;  %v3382_v33 = vunpack.c.l.bf16 %v3888_v29  ;;  %v3943_v44 = vld [vmem:[%s4350_s9 + $0x1c0] sm:$0xff]   ;;  %v3944_v6 = vld [vmem:[%s4350_s9 + $0x1c8] sm:$0xff]  }
  0x1f   : > { %v840_v26 = vsel %vm740_vm0, %v3443_v23, 0.0  ;;  %v798_v35 = vsel %vm740_vm0, %v3415_v32, 0.0  ;;  %v3446_v38 = vunpack.c.l.bf16 %v3904_v34  ;;  %v894_v40 = vsel %vm740_vm0, %v3479_v37, 0.0  ;;  %v3935_v1 = vld [vmem:[%s4350_s9 + $0x180] sm:$0xff]  }
  0x20   : > { %889 = vadd.xlane.f32.xlu1 %v888_v9  ;;  %v984_v30 = vsel %vm740_vm0, %v3539_v27, 0.0  ;;  %v981_v31 = vsel %vm740_vm0, %v3538_v28, 0.0  ;;  %v747_v36 = vsel %vm740_vm0, %v3382_v33, 0.0  ;;  %v3507_v42 = vunpack.c.h.bf16 %v3919_v39  ;;  %v3959_v11 = vld [vmem:[%s4350_s9 + $0x240] sm:$0xff]  }
  0x21   : > { %793 = vadd.xlane.f32.xlu0 %v792_v10  ;;  %v843_v41 = vsel %vm740_vm0, %v3446_v38, 0.0  ;;  %v3506_v43 = vunpack.c.l.bf16 %v3919_v39  ;;  %v3602_v48 = vunpack.c.l.bf16 %v3943_v44  ;;  %v3542_v49 = vunpack.c.l.bf16 %v3928_v45 }
  0x22   : > { %v936_v46 = vsel %vm740_vm0, %v3507_v42, 0.0  ;;  %v3383_v52 = vunpack.c.h.bf16 %v3888_v29  ;;  %v3603_v53 = vunpack.c.h.bf16 %v3943_v44  ;;  %v3447_v57 = vunpack.c.h.bf16 %v3904_v34  ;;  %v3960_v42 = vld [vmem:[%s4350_s9 + $0x248] sm:$0xff]  }
  0x23   : > { %v933_v47 = vsel %vm740_vm0, %v3506_v43, 0.0  ;;  %v1077_v50 = vsel %vm740_vm0, %v3602_v48, 0.0  ;;  %v987_v51 = vsel %vm740_vm0, %v3542_v49, 0.0  ;;  %v3418_v58 = vunpack.c.l.bf16 %v3897_v54 }
  0x24   : > { %745 = vadd.xlane.f32.xlu1 %v744_v15  ;;  %v750_v55 = vsel %vm740_vm0, %v3383_v52, 0.0  ;;  %v1080_v56 = vsel %vm740_vm0, %v3603_v53, 0.0  ;;  %v846_v61 = vsel %vm740_vm0, %v3447_v57, 0.0  ;;  %v3510_v63 = vunpack.c.l.bf16 %v3920_v59  ;;  %v3914_v57 = vld [vmem:[%s4350_s9 + $0xd8] sm:$0xff]  }
  0x25   : > { %742 = vadd.xlane.f32.xlu0 %v741_v16  ;;  %v801_v62 = vsel %vm740_vm0, %v3418_v58, 0.0  ;;  %v3482_v0 = vunpack.c.l.bf16 %v3913_v60  ;;  %v3570_v4 = vunpack.c.l.bf16 %v3935_v1  ;;  %v3543_v5 = vunpack.c.h.bf16 %v3928_v45  ;;  %v3889_v16 = vld [vmem:[%s4350_s9 + $0x10] sm:$0xff]  }
  0x26   : > { %v939_v2 = vsel %vm740_vm0, %v3510_v63, 0.0  ;;  %v3606_v9 = vunpack.c.l.bf16 %v3944_v6  ;;  %v3571_v10 = vunpack.c.h.bf16 %v3935_v1  ;;  %v3667_v14 = vunpack.c.h.bf16 %v3959_v11 }
  0x27   : > { %v897_v3 = vsel %vm740_vm0, %v3482_v0, 0.0  ;;  %v1029_v7 = vsel %vm740_vm0, %v3570_v4, 0.0  ;;  %v990_v8 = vsel %vm740_vm0, %v3543_v5, 0.0  ;;  %v3666_v15 = vunpack.c.l.bf16 %v3959_v11 }
  0x28   : > { %838 = vadd.xlane.f32.xlu1 %v837_v20  ;;  %v1083_v12 = vsel %vm740_vm0, %v3606_v9, 0.0  ;;  %v1032_v13 = vsel %vm740_vm0, %v3571_v10, 0.0  ;;  %v1176_v17 = vsel %vm740_vm0, %v3667_v14, 0.0  ;;  %v3419_v19 = vunpack.c.h.bf16 %v3897_v54 }
  0x29   : > { %796 = vadd.xlane.f32.xlu0 %v795_v21  ;;  %v1173_v18 = vsel %vm740_vm0, %v3666_v15, 0.0  ;;  %v3386_v20 = vunpack.c.l.bf16 %v3889_v16  ;;  %v3905_v21 = vld [vmem:[%s4350_s9 + $0x90] sm:$0xff]   ;;  %v3483_v24 = vunpack.c.h.bf16 %v3913_v60  ;;  %v3607_v34 = vunpack.c.h.bf16 %v3944_v6 }
  0x2a   : > { %v804_v22 = vsel %vm740_vm0, %v3419_v19, 0.0  ;;  %v3387_v49 = vunpack.c.h.bf16 %v3889_v16  ;;  %v3451_v54 = vunpack.c.h.bf16 %v3905_v21 }
  0x2b   : > { %v753_v23 = vsel %vm740_vm0, %v3386_v20, 0.0  ;;  %v900_v27 = vsel %vm740_vm0, %v3483_v24, 0.0  ;;  %v1086_v37 = vsel %vm740_vm0, %v3607_v34, 0.0 }
  0x2c   : > { %892 = vadd.xlane.f32.xlu1 %v891_v25  ;;  %v3450_v25 = vunpack.c.l.bf16 %v3905_v21  ;;  %v756_v52 = vsel %vm740_vm0, %v3387_v49, 0.0  ;;  %v852_v58 = vsel %vm740_vm0, %v3451_v54, 0.0  ;;  %v1804_v49 = vlaneseq  ;;  %v3983_v54 = vld [vmem:[%s4350_s9 + $0x300] sm:$0xff]  }
  0x2d   : > { %841 = vadd.xlane.f32.xlu0 %v840_v26  ;;  %v3929_v26 = vld [vmem:[%s4350_s9 + $0x150] sm:$0xff]  }
  0x2e   : > { %v849_v28 = vsel %vm740_vm0, %v3450_v25, 0.0  ;;  %v3546_v29 = vunpack.c.l.bf16 %v3929_v26  ;;  %v3547_v1 = vunpack.c.h.bf16 %v3929_v26 }
  0x30   : > { %985 = vadd.xlane.f32.xlu1 %v984_v30  ;;  %v3511_v30 = vunpack.c.h.bf16 %v3920_v59  ;;  %v993_v32 = vsel %vm740_vm0, %v3546_v29, 0.0  ;;  %v996_v5 = vsel %vm740_vm0, %v3547_v1, 0.0 }
  0x31   : > { %982 = vadd.xlane.f32.xlu0 %v981_v31  ;;  %v3936_v31 = vld [vmem:[%s4350_s9 + $0x188] sm:$0xff]  }
  0x32   : > { %v942_v33 = vsel %vm740_vm0, %v3511_v30, 0.0  ;;  %v3575_v0 = vunpack.c.h.bf16 %v3936_v31 }
  0x34   : > { %799 = vadd.xlane.f32.xlu1 %v798_v35  ;;  %v3574_v35 = vunpack.c.l.bf16 %v3936_v31  ;;  %v1038_v4 = vsel %vm740_vm0, %v3575_v0, 0.0  ;;  %v3487_v31 = vunpack.c.h.bf16 %v3914_v57 }
  0x35   : > { %748 = vadd.xlane.f32.xlu0 %v747_v36  ;;  %v3951_v36 = vld [vmem:[%s4350_s9 + $0x200] sm:$0xff]  }
  0x36   : > { %v1035_v38 = vsel %vm740_vm0, %v3574_v35, 0.0  ;;  %v3635_v39 = vunpack.c.h.bf16 %v3951_v36  ;;  %v906_v34 = vsel %vm740_vm0, %v3487_v31, 0.0 }
  0x38   : > { %895 = vadd.xlane.f32.xlu1 %v894_v40  ;;  %v3634_v40 = vunpack.c.l.bf16 %v3951_v36  ;;  %v1128_v43 = vsel %vm740_vm0, %v3635_v39, 0.0 }
  0x39   : > { %844 = vadd.xlane.f32.xlu0 %v843_v41  ;;  %v3975_v41 = vld [vmem:[%s4350_s9 + $0x2c0] sm:$0xff]  }
  0x3a   : > { %v1125_v44 = vsel %vm740_vm0, %v3634_v40, 0.0  ;;  %v3730_v45 = vunpack.c.l.bf16 %v3975_v41 }
  0x3c   : > { %937 = vadd.xlane.f32.xlu1 %v936_v46  ;;  %v3670_v46 = vunpack.c.l.bf16 %v3960_v42 }
  0x3d   : > { %934 = vadd.xlane.f32.xlu0 %v933_v47  ;;  %v1269_v47 = vsel %vm740_vm0, %v3730_v45, 0.0 }
  0x3e   : > { %v1179_v48 = vsel %vm740_vm0, %v3670_v46, 0.0 }
  0x40   : > { %1078 = vadd.xlane.f32.xlu1 %v1077_v50  ;;  %v3731_v50 = vunpack.c.h.bf16 %v3975_v41 }
  0x41   : > { %988 = vadd.xlane.f32.xlu0 %v987_v51  ;;  %v3898_v51 = vld [vmem:[%s4350_s9 + $0x58] sm:$0xff]  }
  0x42   : > { %v1272_v53 = vsel %vm740_vm0, %v3731_v50, 0.0  ;;  %v3423_v26 = vunpack.c.h.bf16 %v3898_v51 }
  0x44   : > { %751 = vadd.xlane.f32.xlu1 %v750_v55  ;;  %v3422_v55 = vunpack.c.l.bf16 %v3898_v51  ;;  %v810_v29 = vsel %vm740_vm0, %v3423_v26, 0.0 }
  0x45   : > { %1081 = vadd.xlane.f32.xlu0 %v1080_v56  ;;  %v4425_v56 = vld [vmem:[%s4350_s9 + $0x110] sm:$0xff]  }
  0x46   : > { %v807_v59 = vsel %vm740_vm0, %v3422_v55, 0.0  ;;  %v3514_v60 = vunpack.c.l.bf16 %v4425_v56  ;;  %v4488_v55 = vand.u32 127, %v1804_v49 }
  0x48   : > { %847 = vadd.xlane.f32.xlu1 %v846_v61  ;;  %v3486_v61 = vunpack.c.l.bf16 %v3914_v57 }
  0x49   : > { %802 = vadd.xlane.f32.xlu0 %v801_v62  ;;  %v945_v62 = vsel %vm740_vm0, %v3514_v60, 0.0  ;;  %v4492_v60 = vshrl.u32 %v1804_v49, 7 }
  0x4a   : > { %v903_v63 = vsel %vm740_vm0, %v3486_v61, 0.0  ;;  %v1810_v61 = vadd.s32 4294967288, %v4488_v55 }
  0x4c   : > { %940 = vadd.xlane.f32.xlu1 %v939_v2  ;;  %v4434_v2 = vld [vmem:[%s4350_s9 + $0x208] sm:$0xff]  }
  0x4d   : > { %898 = vadd.xlane.f32.xlu0 %v897_v3  ;;  %v3945_v3 = vld [vmem:[%s4350_s9 + $0x1d0] sm:$0xff]   ;;  %v3638_v6 = vunpack.c.l.bf16 %v4434_v2 }
  0x4e   : > { %v3611_v41 = vunpack.c.h.bf16 %v3945_v3 }
  0x4f   : > { %v1131_v9 = vsel %vm740_vm0, %v3638_v6, 0.0  ;;  %v4504_v6 = vsub.s32 %v4488_v55, %v4492_v60 }
  0x50   : > { %1030 = vadd.xlane.f32.xlu1 %v1029_v7  ;;  %v3610_v7 = vunpack.c.l.bf16 %v3945_v3 }
  0x51   : > { %991 = vadd.xlane.f32.xlu0 %v990_v8  ;;  %v3967_v8 = vld [vmem:[%s4350_s9 + $0x280] sm:$0xff]  }
  0x52   : > { %v1089_v10 = vsel %vm740_vm0, %v3610_v7, 0.0  ;;  %v3698_v11 = vunpack.c.l.bf16 %v3967_v8  ;;  %v4507_v7 = vsub.s32 %v1810_v61, %v4492_v60 }
  0x54   : > { %1084 = vadd.xlane.f32.xlu1 %v1083_v12  ;;  %v3671_v12 = vunpack.c.h.bf16 %v3960_v42  ;;  %v1221_v14 = vsel %vm740_vm0, %v3698_v11, 0.0 }
  0x55   : > { %1033 = vadd.xlane.f32.xlu0 %v1032_v13  ;;  %v3976_v13 = vld [vmem:[%s4350_s9 + $0x2c8] sm:$0xff]  }
  0x56   : > { %v1182_v15 = vsel %vm740_vm0, %v3671_v12, 0.0  ;;  %v3734_v16 = vunpack.c.l.bf16 %v3976_v13 }
  0x58   : > { %1177 = vadd.xlane.f32.xlu1 %v1176_v17  ;;  %v3699_v17 = vunpack.c.h.bf16 %v3967_v8  ;;  %v1275_v19 = vsel %vm740_vm0, %v3734_v16, 0.0 }
  0x59   : > { %1174 = vadd.xlane.f32.xlu0 %v1173_v18  ;;  %v3991_v18 = vld [vmem:[%s4350_s9 + $0x340] sm:$0xff]  }
  0x5a   : > { %v1224_v20 = vsel %vm740_vm0, %v3699_v17, 0.0  ;;  %v3795_v21 = vunpack.c.h.bf16 %v3991_v18 }
  0x5c   : > { %805 = vadd.xlane.f32.xlu1 %v804_v22  ;;  %v3794_v22 = vunpack.c.l.bf16 %v3991_v18  ;;  %v1368_v24 = vsel %vm740_vm0, %v3795_v21, 0.0 }
  0x5d   : > { %754 = vadd.xlane.f32.xlu0 %v753_v23  ;;  %v4450_v23 = vld [vmem:[%s4350_s9 + $0x18] sm:$0xff]  }
  0x5e   : > { %v1365_v25 = vsel %vm740_vm0, %v3794_v22, 0.0  ;;  %v3391_v8 = vunpack.c.h.bf16 %v4450_v23 }
  0x60   : > { %901 = vadd.xlane.f32.xlu1 %v900_v27  ;;  %v3390_v27 = vunpack.c.l.bf16 %v4450_v23 }
  0x61   : > { %850 = vadd.xlane.f32.xlu0 %v849_v28  ;;  %v4456_v28 = vld [vmem:[%s4350_s9 + $0x98] sm:$0xff]  }
  0x62   : > { %v759_v30 = vsel %vm740_vm0, %v3390_v27, 0.0  ;;  %v3455_v26 = vunpack.c.h.bf16 %v4456_v28 }
  0x64   : > { %994 = vadd.xlane.f32.xlu1 %v993_v32  ;;  %v3454_v32 = vunpack.c.l.bf16 %v4456_v28 }
  0x65   : > { %943 = vadd.xlane.f32.xlu0 %v942_v33  ;;  %v4462_v33 = vld [vmem:[%s4350_s9 + $0x158] sm:$0xff]  }
  0x66   : > { %v855_v35 = vsel %vm740_vm0, %v3454_v32, 0.0  ;;  %v3550_v36 = vunpack.c.l.bf16 %v4462_v33  ;;  %v4532_v32 = vld [vmem:[%s4350_s9 + $0x118] sm:$0xff]  }
  0x68   : > { %1087 = vadd.xlane.f32.xlu1 %v1086_v37  ;;  %v3515_v37 = vunpack.c.h.bf16 %v4425_v56  ;;  %v999_v39 = vsel %vm740_vm0, %v3550_v36, 0.0 }
  0x69   : > { %1036 = vadd.xlane.f32.xlu0 %v1035_v38  ;;  %v4469_v38 = vld [vmem:[%s4350_s9 + $0x190] sm:$0xff]  }
  0x6a   : > { %v948_v40 = vsel %vm740_vm0, %v3515_v37, 0.0  ;;  %v3578_v42 = vunpack.c.l.bf16 %v4469_v38  ;;  %v858_v37 = vsel %vm740_vm0, %v3455_v26, 0.0 }
  0x6c   : > { %1129 = vadd.xlane.f32.xlu1 %v1128_v43  ;;  %v4475_v43 = vld [vmem:[%s4350_s9 + $0x250] sm:$0xff]   ;;  %v1041_v45 = vsel %vm740_vm0, %v3578_v42, 0.0 }
  0x6d   : > { %1126 = vadd.xlane.f32.xlu0 %v1125_v44  ;;  %v1092_v44 = vsel %vm740_vm0, %v3611_v41, 0.0  ;;  %v3674_v46 = vunpack.c.l.bf16 %v4475_v43 }
  0x6f   : > { %v1185_v50 = vsel %vm740_vm0, %v3674_v46, 0.0 }
  0x70   : > { %1270 = vadd.xlane.f32.xlu1 %v1269_v47  ;;  %v3639_v47 = vunpack.c.h.bf16 %v4434_v2 }
  0x71   : > { %1180 = vadd.xlane.f32.xlu0 %v1179_v48  ;;  %v4482_v48 = vld [vmem:[%s4350_s9 + $0x288] sm:$0xff]  }
  0x72   : > { %v1134_v51 = vsel %vm740_vm0, %v3639_v47, 0.0 }
  0x74   : > { %757 = vadd.xlane.f32.xlu1 %v756_v52  ;;  %v3735_v52 = vunpack.c.h.bf16 %v3976_v13 }
  0x75   : > { %1273 = vadd.xlane.f32.xlu0 %v1272_v53  ;;  %v3702_v53 = vunpack.c.l.bf16 %v4482_v48 }
  0x76   : > { %v1278_v56 = vsel %vm740_vm0, %v3735_v52, 0.0 }
  0x77   : > { %v1227_v57 = vsel %vm740_vm0, %v3702_v53, 0.0 }
  0x78   : > { %853 = vadd.xlane.f32.xlu1 %v852_v58  ;;  %v3763_v58 = vunpack.c.h.bf16 %v3983_v54 }
  0x79   : > { %808 = vadd.xlane.f32.xlu0 %v807_v59  ;;  %v3762_v59 = vunpack.c.l.bf16 %v3983_v54 }
  0x7a   : > { %v1320_v2 = vsel %vm740_vm0, %v3763_v58, 0.0  ;;  %v4556_v58 = vld [vmem:[%s4350_s9 + $0x1d8] sm:$0xff]  }
  0x7b   : > { %v1317_v3 = vsel %vm740_vm0, %v3762_v59, 0.0 }
  0x7c   : > { %946 = vadd.xlane.f32.xlu1 %v945_v62  ;;  %v4007_v62 = vld [vmem:[%s4350_s9 + $0x3c0] sm:$0xff]  }
  0x7d   : > { %904 = vadd.xlane.f32.xlu0 %v903_v63  ;;  %v4497_v63 = vld [vmem:[%s4350_s9 + $0x348] sm:$0xff]   ;;  %v3859_v13 = vunpack.c.h.bf16 %v4007_v62 }
  0x80   : > { %1039 = vadd.xlane.f32.xlu1 %v1038_v4  ;;  %v3858_v4 = vunpack.c.l.bf16 %v4007_v62 }
  0x81   : > { %997 = vadd.xlane.f32.xlu0 %v996_v5  ;;  %v3798_v5 = vunpack.c.l.bf16 %v4497_v63 }
  0x82   : > { %v1461_v11 = vsel %vm740_vm0, %v3858_v4, 0.0 }
  0x83   : > { %v1371_v12 = vsel %vm740_vm0, %v3798_v5, 0.0 }
  0x84   : > { %1132 = vadd.xlane.f32.xlu1 %v1131_v9 }
  0x85   : > { %1090 = vadd.xlane.f32.xlu0 %v1089_v10 }
  0x88   : > { %1222 = vadd.xlane.f32.xlu1 %v1221_v14  ;;  %v1817_v14 = vadd.s32 4294967280, %v4488_v55 }
  0x89   : > { %1183 = vadd.xlane.f32.xlu0 %v1182_v15 }
  0x8a   : > { %v4529_v31 = vsub.s32 %v1817_v14, %v4492_v60  ;;  %v3675_v14 = vunpack.c.h.bf16 %v4475_v43 }
  0x8c   : > { %1276 = vadd.xlane.f32.xlu1 %v1275_v19  ;;  %v4518_v19 = vld [vmem:[%s4350_s9 + $0x60] sm:$0xff]  }
  0x8d   : > { %1225 = vadd.xlane.f32.xlu0 %v1224_v20  ;;  %v3426_v27 = vunpack.c.l.bf16 %v4518_v19 }
  0x90   : > { %1369 = vadd.xlane.f32.xlu1 %v1368_v24  ;;  %v762_v24 = vsel %vm740_vm0, %v3391_v8, 0.0 }
  0x91   : > { %1366 = vadd.xlane.f32.xlu0 %v1365_v25  ;;  %v1464_v25 = vsel %vm740_vm0, %v3859_v13, 0.0  ;;  %v3703_v13 = vunpack.c.h.bf16 %v4482_v48 }
  0x93   : > { %v1230_v43 = vsel %vm740_vm0, %v3703_v13, 0.0 }
  0x94   : > { %811 = vadd.xlane.f32.xlu1 %v810_v29 }
  0x95   : > { %760 = vadd.xlane.f32.xlu0 %v759_v30 }
  0x98   : > { %907 = vadd.xlane.f32.xlu1 %v906_v34  ;;  %v4535_v34 = vld [vmem:[%s4350_s9 + $0xe0] sm:$0xff]  }
  0x99   : > { %856 = vadd.xlane.f32.xlu0 %v855_v35  ;;  %v3490_v41 = vunpack.c.l.bf16 %v4535_v34 }
  0x9b   : > { %v909_v49 = vsel %vm740_vm0, %v3490_v41, 0.0  ;;  %v3799_v41 = vunpack.c.h.bf16 %v4497_v63 }
  0x9c   : > { %1000 = vadd.xlane.f32.xlu1 %v999_v39  ;;  %v813_v39 = vsel %vm740_vm0, %v3426_v27, 0.0 }
  0x9d   : > { %949 = vadd.xlane.f32.xlu0 %v948_v40  ;;  %v3518_v40 = vunpack.c.l.bf16 %v4532_v32 }
  0x9f   : > { %v951_v47 = vsel %vm740_vm0, %v3518_v40, 0.0 }
  0xa0   : > { %1093 = vadd.xlane.f32.xlu1 %v1092_v44 }
  0xa1   : > { %1042 = vadd.xlane.f32.xlu0 %v1041_v45 }
  0xa4   : > { %1186 = vadd.xlane.f32.xlu1 %v1185_v50  ;;  %v3579_v50 = vunpack.c.h.bf16 %v4469_v38 }
  0xa5   : > { %1135 = vadd.xlane.f32.xlu0 %v1134_v51  ;;  %v3551_v51 = vunpack.c.h.bf16 %v4462_v33 }
  0xa6   : > { %v1044_v62 = vsel %vm740_vm0, %v3579_v50, 0.0 }
  0xa8   : > { %1279 = vadd.xlane.f32.xlu1 %v1278_v56  ;;  %v1824_v56 = vadd.s32 4294967272, %v4488_v55 }
  0xa9   : > { %1228 = vadd.xlane.f32.xlu0 %v1227_v57  ;;  %v887_v0 = vpop.xlane.xlu1 %886  ;;  %v4553_v57 = vld [vmem:[%s4350_s9 + $0x210] sm:$0xff]  }
  0xaa   : > { %v791_v1 = vpop.xlane.xlu0 %790  ;;  %v2076_v15 = vrot.slane %v887_v0, %v4504_v6  ;;  %v1002_v0 = vsel %vm740_vm0, %v3551_v51, 0.0  ;;  %v4567_v5 = vsub.s32 %v1824_v56, %v4492_v60  ;;  %v1374_v51 = vsel %vm740_vm0, %v3799_v41, 0.0  ;;  %v4612_v56 = vld [vmem:[%s4350_s9 + $0x20] sm:$0xff]  }
  0xab   : > { %v1918_v16 = vrot.slane %v791_v1, %v4504_v6  ;;  %v3642_v1 = vunpack.c.l.bf16 %v4553_v57 }
  0xac   : > { %1321 = vadd.xlane.f32.xlu1 %v1320_v2  ;;  %v3614_v2 = vunpack.c.l.bf16 %v4556_v58 }
  0xad   : > { %1318 = vadd.xlane.f32.xlu0 %v1317_v3  ;;  %v890_v9 = vpop.xlane.xlu1 %889 }
  0xae   : > { %v794_v10 = vpop.xlane.xlu0 %793  ;;  %v2080_v17 = vrot.slane %v890_v9, %v4507_v7 }
  0xaf   : > { %v1922_v18 = vrot.slane %v794_v10, %v4507_v7 }
  0xb0   : > { %v2081_v20 = vsel %vm1815_vm1, %v2080_v17, %v2076_v15  ;;  %1462 = vadd.xlane.f32.xlu1 %v1461_v11  ;;  %v1137_v11 = vsel %vm740_vm0, %v3642_v1, 0.0  ;;  %v4577_v17 = vld [vmem:[%s4350_s9 + $0x308] sm:$0xff]   ;;  %v3394_v1 = vunpack.c.l.bf16 %v4612_v56 }
  0xb1   : > { %v1923_v21 = vsel %vm1815_vm1, %v1922_v18, %v1918_v16  ;;  %1372 = vadd.xlane.f32.xlu0 %v1371_v12  ;;  %v746_v22 = vpop.xlane.xlu1 %745  ;;  %v1095_v12 = vsel %vm740_vm0, %v3614_v2, 0.0  ;;  %v4580_v18 = vld [vmem:[%s4350_s9 + $0x2d0] sm:$0xff]  }
  0xb2   : > { %v743_v23 = vpop.xlane.xlu0 %742  ;;  %v1814_v29 = vrot.slane %v746_v22, %v4507_v7 }
  0xb3   : > { %v1809_v30 = vrot.slane %v743_v23, %v4504_v6  ;;  %v1188_v23 = vsel %vm740_vm0, %v3675_v14, 0.0  ;;  %v765_v14 = vsel %vm740_vm0, %v3394_v1, 0.0 }
  0xb4   : > { %763 = vadd.xlane.f32.xlu1 %v762_v24  ;;  %v3766_v24 = vunpack.c.l.bf16 %v4577_v17 }
  0xb5   : > { %v1816_v35 = vsel %vm1815_vm1, %v1814_v29, %v1809_v30  ;;  %1465 = vadd.xlane.f32.xlu0 %v1464_v25  ;;  %v839_v36 = vpop.xlane.xlu1 %838  ;;  %v3738_v25 = vunpack.c.l.bf16 %v4580_v18  ;;  %v3999_v29 = vld [vmem:[%s4350_s9 + $0x380] sm:$0xff]  }
  0xb6   : > { %v797_v28 = vpop.xlane.xlu0 %796  ;;  %v1997_v52 = vrot.slane %v839_v36, %v4504_v6  ;;  %v3826_v40 = vunpack.c.l.bf16 %v3999_v29 }
  0xb7   : > { %v1927_v42 = vrot.slane %v797_v28, %v4529_v31 }
  0xb8   : > { %859 = vadd.xlane.f32.xlu1 %v858_v37  ;;  %v1323_v37 = vsel %vm740_vm0, %v3766_v24, 0.0  ;;  %v1413_v50 = vsel %vm740_vm0, %v3826_v40, 0.0 }
  0xb9   : > { %v1928_v44 = vsel %vm1822_vm2, %v1927_v42, %v1923_v21  ;;  %814 = vadd.xlane.f32.xlu0 %v813_v39  ;;  %v893_v45 = vpop.xlane.xlu1 %892  ;;  %v1281_v39 = vsel %vm740_vm0, %v3738_v25, 0.0 }
  0xba   : > { %v842_v46 = vpop.xlane.xlu0 %841  ;;  %v2085_v53 = vrot.slane %v893_v45, %v4529_v31  ;;  %v4603_v45 = vld [vmem:[%s4350_s9 + $0x3c8] sm:$0xff]  }
  0xbb   : > { %v2001_v54 = vrot.slane %v842_v46, %v4507_v7 }
  0xbc   : > { %v2086_v59 = vsel %vm1822_vm2, %v2085_v53, %v2081_v20  ;;  %952 = vadd.xlane.f32.xlu1 %v951_v47  ;;  %v3827_v53 = vunpack.c.h.bf16 %v3999_v29  ;;  %v3519_v29 = vunpack.c.h.bf16 %v4532_v32 }
  0xbd   : > { %v2002_v61 = vsel %vm1815_vm1, %v2001_v54, %v1997_v52  ;;  %910 = vadd.xlane.f32.xlu0 %v909_v49  ;;  %v986_v38 = vpop.xlane.xlu1 %985  ;;  %v3862_v52 = vunpack.c.l.bf16 %v4603_v45  ;;  %v1831_v54 = vadd.s32 4294967264, %v4488_v55 }
  0xbe   : > { %v983_v33 = vpop.xlane.xlu0 %982  ;;  %v2238_v3 = vrot.slane %v986_v38, %v4507_v7  ;;  %v954_v32 = vsel %vm740_vm0, %v3519_v29, 0.0 }
  0xbf   : > { %v2234_v4 = vrot.slane %v983_v33, %v4504_v6  ;;  %v1467_v33 = vsel %vm740_vm0, %v3862_v52, 0.0 }
  0xc0   : > { %1045 = vadd.xlane.f32.xlu1 %v1044_v62  ;;  %v1416_v62 = vsel %vm740_vm0, %v3827_v53, 0.0  ;;  %v3643_v53 = vunpack.c.h.bf16 %v4553_v57 }
  0xc1   : > { %v2239_v8 = vsel %vm1815_vm1, %v2238_v3, %v2234_v4  ;;  %1003 = vadd.xlane.f32.xlu0 %v1002_v0  ;;  %v800_v9 = vpop.xlane.xlu1 %799  ;;  %v3427_v0 = vunpack.c.h.bf16 %v4518_v19 }
  0xc2   : > { %v749_v10 = vpop.xlane.xlu0 %748  ;;  %v1932_v15 = vrot.slane %v800_v9, %v4567_v5  ;;  %v4626_v9 = vld [vmem:[%s4350_s9 + $0xa0] sm:$0xff]  }
  0xc3   : > { %v1821_v16 = vrot.slane %v749_v10, %v4529_v31  ;;  %v816_v13 = vsel %vm740_vm0, %v3427_v0, 0.0 }
  0xc4   : > { %v4583_v20 = vsel %vm1829_vm3, %v1932_v15, %v1928_v44  ;;  %1138 = vadd.xlane.f32.xlu1 %v1137_v11  ;;  %v3491_v15 = vunpack.c.h.bf16 %v4535_v34 }
  0xc5   : > { %v1823_v21 = vsel %vm1822_vm2, %v1821_v16, %v1816_v35  ;;  %1096 = vadd.xlane.f32.xlu0 %v1095_v12  ;;  %v896_v22 = vpop.xlane.xlu1 %895  ;;  %v3458_v16 = vunpack.c.l.bf16 %v4626_v9 }
  0xc6   : > { %v845_v48 = vpop.xlane.xlu0 %844  ;;  %v2090_v26 = vrot.slane %v896_v22, %v4567_v5  ;;  %v912_v25 = vsel %vm740_vm0, %v3491_v15, 0.0 }
  0xc7   : > { %v2006_v27 = vrot.slane %v845_v48, %v4529_v31  ;;  %v4639_v48 = vld [vmem:[%s4350_s9 + $0x160] sm:$0xff]  }
  0xc8   : > { %v4594_v30 = vsel %vm1829_vm3, %v2090_v26, %v2086_v59  ;;  %1231 = vadd.xlane.f32.xlu1 %v1230_v43  ;;  %v861_v26 = vsel %vm740_vm0, %v3458_v16, 0.0 }
  0xc9   : > { %v2007_v35 = vsel %vm1822_vm2, %v2006_v27, %v2002_v61  ;;  %1189 = vadd.xlane.f32.xlu0 %v1188_v23  ;;  %v938_v36 = vpop.xlane.xlu1 %937  ;;  %v3554_v27 = vunpack.c.l.bf16 %v4639_v48 }
  0xca   : > { %v935_v28 = vpop.xlane.xlu0 %934  ;;  %v2159_v42 = vrot.slane %v938_v36, %v4507_v7 }
  0xcb   : > { %v2155_v44 = vrot.slane %v935_v28, %v4504_v6  ;;  %v4655_v28 = vld [vmem:[%s4350_s9 + $0x198] sm:$0xff]   ;;  %v1005_v41 = vsel %vm740_vm0, %v3554_v27, 0.0 }
  0xcc   : > { %1324 = vadd.xlane.f32.xlu1 %v1323_v37 }
  0xcd   : > { %v2160_v46 = vsel %vm1815_vm1, %v2159_v42, %v2155_v44  ;;  %1282 = vadd.xlane.f32.xlu0 %v1281_v39  ;;  %v1079_v47 = vpop.xlane.xlu1 %1078  ;;  %v3615_v42 = vunpack.c.h.bf16 %v4556_v58  ;;  %v3582_v44 = vunpack.c.l.bf16 %v4655_v28 }
  0xce   : > { %v989_v49 = vpop.xlane.xlu0 %988  ;;  %v2392_v2 = vrot.slane %v1079_v47, %v4504_v6  ;;  %v4670_v47 = vld [vmem:[%s4350_s9 + $0x258] sm:$0xff]  }
  0xcf   : > { %v2243_v63 = vrot.slane %v989_v49, %v4529_v31  ;;  %v1047_v52 = vsel %vm740_vm0, %v3582_v44, 0.0  ;;  %v3678_v58 = vunpack.c.l.bf16 %v4670_v47 }
  0xd0   : > { %1414 = vadd.xlane.f32.xlu1 %v1413_v50 }
  0xd1   : > { %v2244_v59 = vsel %vm1822_vm2, %v2243_v63, %v2239_v8  ;;  %1375 = vadd.xlane.f32.xlu0 %v1374_v51  ;;  %v752_v61 = vpop.xlane.xlu1 %751  ;;  %v4623_v8 = vsub.s32 %v1831_v54, %v4492_v60  ;;  %v1098_v51 = vsel %vm740_vm0, %v3615_v42, 0.0  ;;  %v1191_v1 = vsel %vm740_vm0, %v3678_v58, 0.0  ;;  %v4731_v42 = vld [vmem:[%s4350_s9 + $0x68] sm:$0xff]  }
  0xd2   : > { %v1082_v38 = vpop.xlane.xlu0 %1081  ;;  %v1828_v3 = vrot.slane %v752_v61, %v4567_v5 }
  0xd3   : > { %v2396_v4 = vrot.slane %v1082_v38, %v4507_v7  ;;  %v4684_v38 = vld [vmem:[%s4350_s9 + $0x290] sm:$0xff]  }
  0xd4   : > { %v4629_v10 = vsel %vm1829_vm3, %v1828_v3, %v1823_v21  ;;  %1468 = vadd.xlane.f32.xlu1 %v1467_v33  ;;  %v3739_v3 = vunpack.c.h.bf16 %v4580_v18 }
  0xd5   : > { %v2397_v11 = vsel %vm1815_vm1, %v2396_v4, %v2392_v2  ;;  %1417 = vadd.xlane.f32.xlu0 %v1416_v62  ;;  %v848_v19 = vpop.xlane.xlu1 %847  ;;  %v1140_v2 = vsel %vm740_vm0, %v3643_v53, 0.0  ;;  %v3706_v4 = vunpack.c.l.bf16 %v4684_v38  ;;  %v4748_v53 = vld [vmem:[%s4350_s9 + $0xe8] sm:$0xff]  }
  0xd6   : > { %v803_v12 = vpop.xlane.xlu0 %802  ;;  %v2011_v22 = vrot.slane %v848_v19, %v4567_v5  ;;  %v1284_v16 = vsel %vm740_vm0, %v3739_v3, 0.0 }
  0xd7   : > { %v1937_v21 = vrot.slane %v803_v12, %v4623_v8 }
  0xd8   : > { %v4642_v43 = vsel %vm1829_vm3, %v2011_v22, %v2007_v35  ;;  %817 = vadd.xlane.f32.xlu1 %v816_v13  ;;  %v4702_v13 = vld [vmem:[%s4350_s9 + $0x350] sm:$0xff]   ;;  %v1233_v22 = vsel %vm740_vm0, %v3706_v4, 0.0 }
  0xd9   : > { %v4646_v23 = vsel %vm1836_vm4, %v1937_v21, %v4583_v20  ;;  %766 = vadd.xlane.f32.xlu0 %v765_v14  ;;  %v941_v24 = vpop.xlane.xlu1 %940  ;;  %v3802_v21 = vunpack.c.l.bf16 %v4702_v13 }
  0xda   : > { %v899_v34 = vpop.xlane.xlu0 %898  ;;  %v2164_v35 = vrot.slane %v941_v24, %v4529_v31  ;;  %v3767_v24 = vunpack.c.h.bf16 %v4577_v17 }
  0xdb   : > { %v2095_v36 = vrot.slane %v899_v34, %v4623_v8  ;;  %v1377_v17 = vsel %vm740_vm0, %v3802_v21, 0.0 }
  0xdc   : > { %v4658_v20 = vsel %vm1822_vm2, %v2164_v35, %v2160_v46  ;;  %913 = vadd.xlane.f32.xlu1 %v912_v25 }
  0xdd   : > { %v4662_v37 = vsel %vm1836_vm4, %v2095_v36, %v4594_v30  ;;  %862 = vadd.xlane.f32.xlu0 %v861_v26  ;;  %v1031_v39 = vpop.xlane.xlu1 %1030  ;;  %v4714_v26 = vld [vmem:[%s4350_s9 + $0x388] sm:$0xff]  }
  0xde   : > { %v992_v40 = vpop.xlane.xlu0 %991  ;;  %v2313_v63 = vrot.slane %v1031_v39, %v4504_v6  ;;  %v1326_v39 = vsel %vm740_vm0, %v3767_v24, 0.0 }
  0xdf   : > { %v2248_v46 = vrot.slane %v992_v40, %v4567_v5  ;;  %v3863_v40 = vunpack.c.h.bf16 %v4603_v45 }
  0xe0   : > { %1006 = vadd.xlane.f32.xlu1 %v1005_v41  ;;  %v3830_v41 = vunpack.c.l.bf16 %v4714_v26 }
  0xe1   : > { %v4673_v30 = vsel %vm1829_vm3, %v2248_v46, %v2244_v59  ;;  %955 = vadd.xlane.f32.xlu0 %v954_v32  ;;  %v1085_v49 = vpop.xlane.xlu1 %1084  ;;  %v1838_v59 = vadd.s32 4294967256, %v4488_v55 }
  0xe2   : > { %v1034_v50 = vpop.xlane.xlu0 %1033  ;;  %v2401_v54 = vrot.slane %v1085_v49, %v4529_v31  ;;  %v1470_v49 = vsel %vm740_vm0, %v3863_v40, 0.0 }
  0xe3   : > { %v2317_v61 = vrot.slane %v1034_v50, %v4507_v7  ;;  %v4699_v12 = vsub.s32 %v1838_v59, %v4492_v60  ;;  %v1419_v50 = vsel %vm740_vm0, %v3830_v41, 0.0 }
  0xe4   : > { %v4687_v33 = vsel %vm1822_vm2, %v2401_v54, %v2397_v11  ;;  %1099 = vadd.xlane.f32.xlu1 %v1098_v51  ;;  %v3430_v51 = vunpack.c.l.bf16 %v4731_v42 }
  0xe5   : > { %v4690_v62 = vsel %vm1815_vm1, %v2317_v61, %v2313_v63  ;;  %1048 = vadd.xlane.f32.xlu0 %v1047_v52  ;;  %v1178_v57 = vpop.xlane.xlu1 %1177  ;;  %v3395_v52 = vunpack.c.h.bf16 %v4612_v56 }
  0xe6   : > { %v1175_v0 = vpop.xlane.xlu0 %1174  ;;  %v2554_v19 = vrot.slane %v1178_v57, %v4507_v7  ;;  %v819_v56 = vsel %vm740_vm0, %v3430_v51, 0.0  ;;  %v3494_v57 = vunpack.c.l.bf16 %v4748_v53 }
  0xe7   : > { %v2550_v11 = vrot.slane %v1175_v0, %v4504_v6  ;;  %v768_v59 = vsel %vm740_vm0, %v3395_v52, 0.0  ;;  %v3459_v0 = vunpack.c.h.bf16 %v4626_v9  ;;  %v4811_v52 = vld [vmem:[%s4350_s9 + $0x2d8] sm:$0xff]  }
  0xe8   : > { %1192 = vadd.xlane.f32.xlu1 %v1191_v1  ;;  %v915_v9 = vsel %vm740_vm0, %v3494_v57, 0.0  ;;  %v3707_v57 = vunpack.c.h.bf16 %v4684_v38 }
  0xe9   : > { %v4705_v14 = vsel %vm1815_vm1, %v2554_v19, %v2550_v11  ;;  %1141 = vadd.xlane.f32.xlu0 %v1140_v2  ;;  %v806_v15 = vpop.xlane.xlu1 %805  ;;  %v4765_v2 = vld [vmem:[%s4350_s9 + $0x120] sm:$0xff]   ;;  %v864_v11 = vsel %vm740_vm0, %v3459_v0, 0.0 }
  0xea   : > { %v755_v18 = vpop.xlane.xlu0 %754  ;;  %v1942_v34 = vrot.slane %v806_v15, %v4699_v12  ;;  %v3555_v15 = vunpack.c.h.bf16 %v4639_v48 }
  0xeb   : > { %v1835_v25 = vrot.slane %v755_v18, %v4623_v8  ;;  %v3522_v18 = vunpack.c.l.bf16 %v4765_v2 }
  0xec   : > { %v4718_v27 = vsel %vm1843_vm5, %v1942_v34, %v4646_v23  ;;  %1285 = vadd.xlane.f32.xlu1 %v1284_v16  ;;  %v1008_v34 = vsel %vm740_vm0, %v3555_v15, 0.0  ;;  %v3803_v15 = vunpack.c.h.bf16 %v4702_v13 }
  0xed   : > { %v4722_v29 = vsel %vm1836_vm4, %v1835_v25, %v4629_v10  ;;  %1234 = vadd.xlane.f32.xlu0 %v1233_v22  ;;  %v902_v35 = vpop.xlane.xlu1 %901  ;;  %v4782_v22 = vld [vmem:[%s4350_s9 + $0x1e0] sm:$0xff]   ;;  %v957_v48 = vsel %vm740_vm0, %v3522_v18, 0.0 }
  0xee   : > { %v851_v36 = vpop.xlane.xlu0 %850  ;;  %v2100_v23 = vrot.slane %v902_v35, %v4699_v12  ;;  %v3618_v25 = vunpack.c.l.bf16 %v4782_v22  ;;  %v3583_v35 = vunpack.c.h.bf16 %v4655_v28  ;;  %v3679_v28 = vunpack.c.h.bf16 %v4670_v47 }
  0xef   : > { %v2016_v32 = vrot.slane %v851_v36, %v4623_v8 }
  0xf0   : > { %v4735_v10 = vsel %vm1843_vm5, %v2100_v23, %v4662_v37  ;;  %1378 = vadd.xlane.f32.xlu1 %v1377_v17  ;;  %v1845_v17 = vadd.s32 4294967248, %v4488_v55 }
  0xf1   : > { %v4739_v44 = vsel %vm1836_vm4, %v2016_v32, %v4642_v43  ;;  %1327 = vadd.xlane.f32.xlu0 %v1326_v39  ;;  %v995_v45 = vpop.xlane.xlu1 %994  ;;  %v4794_v39 = vld [vmem:[%s4350_s9 + $0x218] sm:$0xff]   ;;  %v1101_v32 = vsel %vm740_vm0, %v3618_v25, 0.0 }
  0xf2   : > { %v944_v46 = vpop.xlane.xlu0 %943  ;;  %v2253_v37 = vrot.slane %v995_v45, %v4623_v8  ;;  %v1050_v45 = vsel %vm740_vm0, %v3583_v35, 0.0  ;;  %v3831_v35 = vunpack.c.h.bf16 %v4714_v26 }
  0xf3   : > { %v2169_v58 = vrot.slane %v944_v46, %v4567_v5  ;;  %v3646_v46 = vunpack.c.l.bf16 %v4794_v39 }
  0xf4   : > { %v4752_v43 = vsel %vm1836_vm4, %v2253_v37, %v4673_v30  ;;  %1471 = vadd.xlane.f32.xlu1 %v1470_v49 }
  0xf5   : > { %v4756_v63 = vsel %vm1829_vm3, %v2169_v58, %v4658_v20  ;;  %1420 = vadd.xlane.f32.xlu0 %v1419_v50  ;;  %v1088_v54 = vpop.xlane.xlu1 %1087 }
  0xf6   : > { %v1037_v61 = vpop.xlane.xlu0 %1036  ;;  %v2406_v30 = vrot.slane %v1088_v54, %v4567_v5 }
  0xf7   : > { %v2322_v1 = vrot.slane %v1037_v61, %v4529_v31  ;;  %v1194_v61 = vsel %vm740_vm0, %v3679_v28, 0.0  ;;  %v3431_v28 = vunpack.c.h.bf16 %v4731_v42 }
  0xf8   : > { %v4769_v20 = vsel %vm1829_vm3, %v2406_v30, %v4687_v33  ;;  %820 = vadd.xlane.f32.xlu1 %v819_v56  ;;  %v1143_v56 = vsel %vm740_vm0, %v3646_v46, 0.0  ;;  %v4827_v30 = vld [vmem:[%s4350_s9 + $0x310] sm:$0xff]  }
  0xf9   : > { %v4773_v3 = vsel %vm1822_vm2, %v2322_v1, %v4690_v62  ;;  %769 = vadd.xlane.f32.xlu0 %v768_v59  ;;  %v1130_v4 = vpop.xlane.xlu1 %1129  ;;  %v3742_v59 = vunpack.c.l.bf16 %v4811_v52  ;;  %v3770_v18 = vunpack.c.l.bf16 %v4827_v30 }
  0xfa   : > { %v1127_v19 = vpop.xlane.xlu0 %1126  ;;  %v2475_v33 = vrot.slane %v1130_v4, %v4507_v7 }
  0xfb   : > { %v2471_v16 = vrot.slane %v1127_v19, %v4504_v6  ;;  %v1287_v38 = vsel %vm740_vm0, %v3742_v59, 0.0 }
  0xfc   : > { %916 = vadd.xlane.f32.xlu1 %v915_v9 }
  0xfd   : > { %v4785_v62 = vsel %vm1815_vm1, %v2475_v33, %v2471_v16  ;;  %865 = vadd.xlane.f32.xlu0 %v864_v11  ;;  %v1271_v21 = vpop.xlane.xlu1 %1270  ;;  %v1236_v11 = vsel %vm740_vm0, %v3707_v57, 0.0  ;;  %v4844_v16 = vld [vmem:[%s4350_s9 + $0x3d0] sm:$0xff]   ;;  %v4894_v57 = vld [vmem:[%s4350_s9 + $0x168] sm:$0xff]  }
  0xfe   : > { %v1181_v24 = vpop.xlane.xlu0 %1180  ;;  %v2708_v49 = vrot.slane %v1271_v21, %v4504_v6  ;;  %v3866_v25 = vunpack.c.l.bf16 %v4844_v16 }
  0xff   : > { %v2559_v36 = vrot.slane %v1181_v24, %v4529_v31 }
 0x100   : > { %1009 = vadd.xlane.f32.xlu1 %v1008_v34  ;;  %v1380_v34 = vsel %vm740_vm0, %v3803_v15, 0.0  ;;  %v1473_v26 = vsel %vm740_vm0, %v3866_v25, 0.0  ;;  %v3619_v25 = vunpack.c.h.bf16 %v4782_v22 }
 0x101   : > { %v4798_v40 = vsel %vm1822_vm2, %v2559_v36, %v4705_v14  ;;  %958 = vadd.xlane.f32.xlu0 %v957_v48  ;;  %v758_v41 = vpop.xlane.xlu1 %757  ;;  %v4808_v14 = vsub.s32 %v1845_v17, %v4492_v60  ;;  %v1329_v48 = vsel %vm740_vm0, %v3770_v18, 0.0  ;;  %v4861_v17 = vld [vmem:[%s4350_s9 + $0x28] sm:$0xff]  }
 0x102   : > { %v1274_v23 = vpop.xlane.xlu0 %1273  ;;  %v1842_v50 = vrot.slane %v758_v41, %v4699_v12  ;;  %v3398_v46 = vunpack.c.l.bf16 %v4861_v17 }
 0x103   : > { %v2712_v51 = vrot.slane %v1274_v23, %v4507_v7 }
 0x104   : > { %v4815_v37 = vsel %vm1843_vm5, %v1842_v50, %v4722_v29  ;;  %1102 = vadd.xlane.f32.xlu1 %v1101_v32  ;;  %v4878_v50 = vld [vmem:[%s4350_s9 + $0xa8] sm:$0xff]  }
 0x105   : > { %v4818_v47 = vsel %vm1815_vm1, %v2712_v51, %v2708_v49  ;;  %1051 = vadd.xlane.f32.xlu0 %v1050_v45  ;;  %v854_v58 = vpop.xlane.xlu1 %853  ;;  %v1422_v45 = vsel %vm740_vm0, %v3831_v35, 0.0  ;;  %v3462_v59 = vunpack.c.l.bf16 %v4878_v50 }
 0x106   : > { %v809_v54 = vpop.xlane.xlu0 %808  ;;  %v2021_v29 = vrot.slane %v854_v58, %v4699_v12 }
 0x107   : > { %v1947_v0 = vrot.slane %v809_v54, %v4808_v14  ;;  %v822_v54 = vsel %vm740_vm0, %v3431_v28, 0.0 }
 0x108   : > { %v4831_v1 = vsel %vm1843_vm5, %v2021_v29, %v4739_v44  ;;  %1195 = vadd.xlane.f32.xlu1 %v1194_v61  ;;  %v771_v61 = vsel %vm740_vm0, %v3398_v46, 0.0 }
 0x109   : > { %v4835_v4 = vsel %vm1850_vm6, %v1947_v0, %v4718_v27  ;;  %1144 = vadd.xlane.f32.xlu0 %v1143_v56  ;;  %v947_v19 = vpop.xlane.xlu1 %946  ;;  %v3495_v56 = vunpack.c.h.bf16 %v4748_v53  ;;  %v3558_v53 = vunpack.c.l.bf16 %v4894_v57 }
 0x10a   : > { %v905_v9 = vpop.xlane.xlu0 %904  ;;  %v2174_v44 = vrot.slane %v947_v19, %v4623_v8 }
 0x10b   : > { %v2105_v33 = vrot.slane %v905_v9, %v4808_v14  ;;  %v918_v19 = vsel %vm740_vm0, %v3495_v56, 0.0  ;;  %v867_v9 = vsel %vm740_vm0, %v3462_v59, 0.0 }
 0x10c   : > { %v4848_v27 = vsel %vm1836_vm4, %v2174_v44, %v4756_v63  ;;  %1288 = vadd.xlane.f32.xlu1 %v1287_v38  ;;  %v3523_v38 = vunpack.c.h.bf16 %v4765_v2  ;;  %v4909_v44 = vld [vmem:[%s4350_s9 + $0x1a0] sm:$0xff]  }
 0x10d   : > { %v4852_v21 = vsel %vm1850_vm6, %v2105_v33, %v4735_v10  ;;  %1237 = vadd.xlane.f32.xlu0 %v1236_v11  ;;  %v1040_v13 = vpop.xlane.xlu1 %1039  ;;  %v3586_v35 = vunpack.c.l.bf16 %v4909_v44 }
 0x10e   : > { %v998_v24 = vpop.xlane.xlu0 %997  ;;  %v2327_v63 = vrot.slane %v1040_v13, %v4567_v5 }
 0x10f   : > { %v2258_v36 = vrot.slane %v998_v24, %v4699_v12  ;;  %v1053_v28 = vsel %vm740_vm0, %v3586_v35, 0.0 }
 0x110   : > { %v4865_v10 = vsel %vm1829_vm3, %v2327_v63, %v4773_v3  ;;  %1381 = vadd.xlane.f32.xlu1 %v1380_v34  ;;  %v1011_v34 = vsel %vm740_vm0, %v3558_v53, 0.0 }
 0x111   : > { %v4869_v41 = vsel %vm1843_vm5, %v2258_v36, %v4752_v43  ;;  %1330 = vadd.xlane.f32.xlu0 %v1329_v48  ;;  %v1133_v23 = vpop.xlane.xlu1 %1132  ;;  %v960_v48 = vsel %vm740_vm0, %v3523_v38, 0.0 }
 0x112   : > { %v1091_v32 = vpop.xlane.xlu0 %1090  ;;  %v2480_v3 = vrot.slane %v1133_v23, %v4529_v31  ;;  %v4928_v23 = vld [vmem:[%s4350_s9 + $0x260] sm:$0xff]  }
 0x113   : > { %v2411_v49 = vrot.slane %v1091_v32, %v4623_v8  ;;  %v3682_v46 = vunpack.c.l.bf16 %v4928_v23 }
 0x114   : > { %v4882_v43 = vsel %vm1822_vm2, %v2480_v3, %v4785_v62  ;;  %1474 = vadd.xlane.f32.xlu1 %v1473_v26  ;;  %v3647_v3 = vunpack.c.h.bf16 %v4794_v39 }
 0x115   : > { %v4886_v51 = vsel %vm1836_vm4, %v2411_v49, %v4769_v20  ;;  %1423 = vadd.xlane.f32.xlu0 %v1422_v45  ;;  %v1223_v42 = vpop.xlane.xlu1 %1222  ;;  %v1104_v45 = vsel %vm740_vm0, %v3619_v25, 0.0  ;;  %v1197_v39 = vsel %vm740_vm0, %v3682_v46, 0.0 }
 0x116   : > { %v1184_v58 = vpop.xlane.xlu0 %1183  ;;  %v2629_v11 = vrot.slane %v1223_v42, %v4504_v6 }
 0x117   : > { %v2564_v62 = vrot.slane %v1184_v58, %v4567_v5  ;;  %v4940_v58 = vld [vmem:[%s4350_s9 + $0x298] sm:$0xff]  }
 0x118   : > { %823 = vadd.xlane.f32.xlu1 %v822_v54 }
 0x119   : > { %v4898_v20 = vsel %vm1829_vm3, %v2564_v62, %v4798_v40  ;;  %772 = vadd.xlane.f32.xlu0 %v771_v61  ;;  %v1277_v29 = vpop.xlane.xlu1 %1276  ;;  %v1852_v40 = vadd.s32 4294967240, %v4488_v55  ;;  %v1146_v62 = vsel %vm740_vm0, %v3647_v3, 0.0 }
 0x11a   : > { %v1226_v0 = vpop.xlane.xlu0 %1225  ;;  %v2717_v15 = vrot.slane %v1277_v29, %v4529_v31  ;;  %v3743_v29 = vunpack.c.h.bf16 %v4811_v52 }
 0x11b   : > { %v2633_v18 = vrot.slane %v1226_v0, %v4507_v7  ;;  %v4925_v36 = vsub.s32 %v1852_v40, %v4492_v60  ;;  %v3710_v0 = vunpack.c.l.bf16 %v4940_v58  ;;  %v3771_v40 = vunpack.c.h.bf16 %v4827_v30 }
 0x11c   : > { %v4913_v33 = vsel %vm1822_vm2, %v2717_v15, %v4818_v47  ;;  %919 = vadd.xlane.f32.xlu1 %v918_v19 }
 0x11d   : > { %v4916_v13 = vsel %vm1815_vm1, %v2633_v18, %v2629_v11  ;;  %868 = vadd.xlane.f32.xlu0 %v867_v9  ;;  %v1370_v2 = vpop.xlane.xlu1 %1369  ;;  %v4957_v9 = vld [vmem:[%s4350_s9 + $0x358] sm:$0xff]   ;;  %v1290_v11 = vsel %vm740_vm0, %v3743_v29, 0.0  ;;  %v1239_v15 = vsel %vm740_vm0, %v3710_v0, 0.0  ;;  %v1332_v35 = vsel %vm740_vm0, %v3771_v40, 0.0 }
 0x11e   : > { %v1367_v24 = vpop.xlane.xlu0 %1366  ;;  %v2870_v63 = vrot.slane %v1370_v2, %v4507_v7  ;;  %v3806_v18 = vunpack.c.l.bf16 %v4957_v9 }
 0x11f   : > { %v2866_v47 = vrot.slane %v1367_v24, %v4504_v6  ;;  %v4974_v24 = vld [vmem:[%s4350_s9 + $0x390] sm:$0xff]  }
 0x120   : > { %1012 = vadd.xlane.f32.xlu1 %v1011_v34  ;;  %v1383_v30 = vsel %vm740_vm0, %v3806_v18, 0.0 }
 0x121   : > { %v4931_v32 = vsel %vm1815_vm1, %v2870_v63, %v2866_v47  ;;  %961 = vadd.xlane.f32.xlu0 %v960_v48  ;;  %v812_v26 = vpop.xlane.xlu1 %811  ;;  %v3867_v63 = vunpack.c.h.bf16 %v4844_v16  ;;  %v3834_v47 = vunpack.c.l.bf16 %v4974_v24 }
 0x122   : > { %v761_v22 = vpop.xlane.xlu0 %760  ;;  %v1952_v49 = vrot.slane %v812_v26, %v4925_v36 }
 0x123   : > { %v1849_v42 = vrot.slane %v761_v22, %v4808_v14  ;;  %v4991_v22 = vld [vmem:[%s4350_s9 + $0x70] sm:$0xff]   ;;  %v1476_v46 = vsel %vm740_vm0, %v3867_v63, 0.0  ;;  %v1425_v3 = vsel %vm740_vm0, %v3834_v47, 0.0 }
 0x124   : > { %v4944_v54 = vsel %vm1857_vm7, %v1952_v49, %v4835_v4  ;;  %1105 = vadd.xlane.f32.xlu1 %v1104_v45  ;;  %v3434_v49 = vunpack.c.l.bf16 %v4991_v22 }
 0x125   : > { %v4948_v61 = vsel %vm1850_vm6, %v1849_v42, %v4815_v37  ;;  %1054 = vadd.xlane.f32.xlu0 %v1053_v28  ;;  %v908_v56 = vpop.xlane.xlu1 %907  ;;  %v3399_v42 = vunpack.c.h.bf16 %v4861_v17 }
 0x126   : > { %v857_v59 = vpop.xlane.xlu0 %856  ;;  %v2110_v4 = vrot.slane %v908_v56, %v4925_v36  ;;  %v825_v17 = vsel %vm740_vm0, %v3434_v49, 0.0 }
 0x127   : > { %v2026_v19 = vrot.slane %v857_v59, %v4808_v14  ;;  %v5008_v59 = vld [vmem:[%s4350_s9 + $0xf0] sm:$0xff]   ;;  %v774_v0 = vsel %vm740_vm0, %v3399_v42, 0.0 }
 0x128   : > { %v4961_v37 = vsel %vm1857_vm7, %v2110_v4, %v4852_v21  ;;  %1198 = vadd.xlane.f32.xlu1 %v1197_v39  ;;  %v3498_v4 = vunpack.c.l.bf16 %v5008_v59 }
 0x129   : > { %v4965_v53 = vsel %vm1850_vm6, %v2026_v19, %v4831_v1  ;;  %1147 = vadd.xlane.f32.xlu0 %v1146_v62  ;;  %v1001_v52 = vpop.xlane.xlu1 %1000  ;;  %v3463_v19 = vunpack.c.h.bf16 %v4878_v50 }
 0x12a   : > { %v950_v38 = vpop.xlane.xlu0 %949  ;;  %v2263_v21 = vrot.slane %v1001_v52, %v4808_v14  ;;  %v921_v50 = vsel %vm740_vm0, %v3498_v4, 0.0 }
 0x12b   : > { %v2179_v2 = vrot.slane %v950_v38, %v4699_v12  ;;  %v5025_v38 = vld [vmem:[%s4350_s9 + $0x128] sm:$0xff]   ;;  %v870_v40 = vsel %vm740_vm0, %v3463_v19, 0.0 }
 0x12c   : > { %v4978_v1 = vsel %vm1850_vm6, %v2263_v21, %v4869_v41  ;;  %1291 = vadd.xlane.f32.xlu1 %v1290_v11  ;;  %v3559_v21 = vunpack.c.h.bf16 %v4894_v57 }
 0x12d   : > { %v4982_v34 = vsel %vm1843_vm5, %v2179_v2, %v4848_v27  ;;  %1240 = vadd.xlane.f32.xlu0 %v1239_v15  ;;  %v1094_v48 = vpop.xlane.xlu1 %1093  ;;  %v3526_v2 = vunpack.c.l.bf16 %v5025_v38 }
 0x12e   : > { %v1043_v25 = vpop.xlane.xlu0 %1042  ;;  %v2416_v41 = vrot.slane %v1094_v48, %v4699_v12  ;;  %v1014_v63 = vsel %vm740_vm0, %v3559_v21, 0.0  ;;  %v5087_v21 = vld [vmem:[%s4350_s9 + $0x318] sm:$0xff]  }
 0x12f   : > { %v2332_v26 = vrot.slane %v1043_v25, %v4623_v8  ;;  %v5042_v25 = vld [vmem:[%s4350_s9 + $0x1e8] sm:$0xff]   ;;  %v963_v57 = vsel %vm740_vm0, %v3526_v2, 0.0 }
 0x130   : > { %v4995_v27 = vsel %vm1843_vm5, %v2416_v41, %v4886_v51  ;;  %1384 = vadd.xlane.f32.xlu1 %v1383_v30  ;;  %v3622_v47 = vunpack.c.l.bf16 %v5042_v25  ;;  %v3587_v41 = vunpack.c.h.bf16 %v4909_v44  ;;  %v3683_v44 = vunpack.c.h.bf16 %v4928_v23 }
 0x131   : > { %v4999_v45 = vsel %vm1836_vm4, %v2332_v26, %v4865_v10  ;;  %1333 = vadd.xlane.f32.xlu0 %v1332_v35  ;;  %v1187_v16 = vpop.xlane.xlu1 %1186 }
 0x132   : > { %v1136_v28 = vpop.xlane.xlu0 %1135  ;;  %v2569_v51 = vrot.slane %v1187_v16, %v4623_v8  ;;  %v1859_v16 = vadd.s32 4294967232, %v4488_v55  ;;  %v1107_v42 = vsel %vm740_vm0, %v3622_v47, 0.0 }
 0x133   : > { %v2485_v56 = vrot.slane %v1136_v28, %v4567_v5  ;;  %v5054_v28 = vld [vmem:[%s4350_s9 + $0x220] sm:$0xff]  }
 0x134   : > { %v5012_v10 = vsel %vm1836_vm4, %v2569_v51, %v4898_v20  ;;  %1477 = vadd.xlane.f32.xlu1 %v1476_v46  ;;  %v1056_v51 = vsel %vm740_vm0, %v3587_v41, 0.0  ;;  %v5104_v41 = vld [vmem:[%s4350_s9 + $0x3d8] sm:$0xff]  }
 0x135   : > { %v5016_v39 = vsel %vm1829_vm3, %v2485_v56, %v4882_v43  ;;  %1426 = vadd.xlane.f32.xlu0 %v1425_v3  ;;  %v1280_v62 = vpop.xlane.xlu1 %1279  ;;  %v3650_v56 = vunpack.c.l.bf16 %v5054_v28 }
 0x136   : > { %v1229_v29 = vpop.xlane.xlu0 %1228  ;;  %v2722_v20 = vrot.slane %v1280_v62, %v4567_v5 }
 0x137   : > { %v2638_v52 = vrot.slane %v1229_v29, %v4529_v31 }
 0x138   : > { %v5029_v43 = vsel %vm1829_vm3, %v2722_v20, %v4913_v33  ;;  %826 = vadd.xlane.f32.xlu1 %v825_v17 }
 0x139   : > { %v5033_v11 = vsel %vm1822_vm2, %v2638_v52, %v4916_v13  ;;  %775 = vadd.xlane.f32.xlu0 %v774_v0  ;;  %v1322_v15 = vpop.xlane.xlu1 %1321  ;;  %v5071_v0 = vld [vmem:[%s4350_s9 + $0x2e0] sm:$0xff]   ;;  %v1200_v52 = vsel %vm740_vm0, %v3683_v44, 0.0 }
 0x13a   : > { %v1319_v18 = vpop.xlane.xlu0 %1318  ;;  %v2791_v33 = vrot.slane %v1322_v15, %v4507_v7  ;;  %v1149_v15 = vsel %vm740_vm0, %v3650_v56, 0.0  ;;  %v5121_v56 = vld [vmem:[%s4350_s9 + $0x30] sm:$0xff]  }
 0x13b   : > { %v2787_v48 = vrot.slane %v1319_v18, %v4504_v6  ;;  %v3746_v18 = vunpack.c.l.bf16 %v5071_v0 }
 0x13c   : > { %922 = vadd.xlane.f32.xlu1 %v921_v50  ;;  %v3711_v50 = vunpack.c.h.bf16 %v4940_v58 }
 0x13d   : > { %v5045_v13 = vsel %vm1815_vm1, %v2791_v33, %v2787_v48  ;;  %871 = vadd.xlane.f32.xlu0 %v870_v40  ;;  %v1463_v30 = vpop.xlane.xlu1 %1462  ;;  %v1293_v58 = vsel %vm740_vm0, %v3746_v18, 0.0  ;;  %v5138_v18 = vld [vmem:[%s4350_s9 + $0xb0] sm:$0xff]  }
 0x13e   : > { %v1373_v35 = vpop.xlane.xlu0 %1372  ;;  %v3024_v62 = vrot.slane %v1463_v30, %v4504_v6 }
 0x13f   : > { %v2875_v26 = vrot.slane %v1373_v35, %v4529_v31  ;;  %v1242_v35 = vsel %vm740_vm0, %v3711_v50, 0.0 }
 0x140   : > { %1015 = vadd.xlane.f32.xlu1 %v1014_v63  ;;  %v3807_v63 = vunpack.c.h.bf16 %v4957_v9 }
 0x141   : > { %v5058_v46 = vsel %vm1822_vm2, %v2875_v26, %v4931_v32  ;;  %964 = vadd.xlane.f32.xlu0 %v963_v57  ;;  %v764_v3 = vpop.xlane.xlu1 %763  ;;  %v5068_v32 = vsub.s32 %v1859_v16, %v4492_v60  ;;  %v3774_v57 = vunpack.c.l.bf16 %v5087_v21 }
 0x142   : > { %v1466_v49 = vpop.xlane.xlu0 %1465  ;;  %v1856_v29 = vrot.slane %v764_v3, %v4925_v36  ;;  %v1386_v3 = vsel %vm740_vm0, %v3807_v63, 0.0  ;;  %v5155_v63 = vld [vmem:[%s4350_s9 + $0x170] sm:$0xff]  }
 0x143   : > { %v3028_v17 = vrot.slane %v1466_v49, %v4507_v7  ;;  %v1335_v49 = vsel %vm740_vm0, %v3774_v57, 0.0 }
 0x144   : > { %v5075_v4 = vsel %vm1857_vm7, %v1856_v29, %v4948_v61  ;;  %1108 = vadd.xlane.f32.xlu1 %v1107_v42  ;;  %v3870_v42 = vunpack.c.l.bf16 %v5104_v41 }
 0x145   : > { %v5078_v23 = vsel %vm1815_vm1, %v3028_v17, %v3024_v62  ;;  %1057 = vadd.xlane.f32.xlu0 %v1056_v51  ;;  %v860_v19 = vpop.xlane.xlu1 %859  ;;  %v3835_v51 = vunpack.c.h.bf16 %v4974_v24 }
 0x146   : > { %v815_v20 = vpop.xlane.xlu0 %814  ;;  %v2031_v61 = vrot.slane %v860_v19, %v4925_v36  ;;  %v1479_v24 = vsel %vm740_vm0, %v3870_v42, 0.0  ;;  %v5172_v42 = vld [vmem:[%s4350_s9 + $0x1a8] sm:$0xff]  }
 0x147   : > { %v1957_v40 = vrot.slane %v815_v20, %v5068_v32  ;;  %v1428_v19 = vsel %vm740_vm0, %v3835_v51, 0.0  ;;  %v3435_v20 = vunpack.c.h.bf16 %v4991_v22 }
 0x148   : > { %v5091_v2 = vsel %vm1857_vm7, %v2031_v61, %v4965_v53  ;;  %1201 = vadd.xlane.f32.xlu1 %v1200_v52  ;;  %v3402_v52 = vunpack.c.l.bf16 %v5121_v56 }
 0x149   : > { %v5095_v33 = vsel %vm1864_vm8, %v1957_v40, %v4944_v54  ;;  %1150 = vadd.xlane.f32.xlu0 %v1149_v15  ;;  %v953_v48 = vpop.xlane.xlu1 %952  ;;  %v828_v40 = vsel %vm740_vm0, %v3435_v20, 0.0  ;;  %v5189_v20 = vld [vmem:[%s4350_s9 + $0x268] sm:$0xff]  }
 0x14a   : > { %v911_v30 = vpop.xlane.xlu0 %910  ;;  %v2184_v53 = vrot.slane %v953_v48, %v4808_v14  ;;  %v777_v48 = vsel %vm740_vm0, %v3402_v52, 0.0 }
 0x14b   : > { %v2115_v47 = vrot.slane %v911_v30, %v5068_v32  ;;  %v3499_v30 = vunpack.c.h.bf16 %v5008_v59 }
 0x14c   : > { %v5108_v54 = vsel %vm1850_vm6, %v2184_v53, %v4982_v34  ;;  %1294 = vadd.xlane.f32.xlu1 %v1293_v58  ;;  %v3466_v58 = vunpack.c.l.bf16 %v5138_v18 }
 0x14d   : > { %v5112_v26 = vsel %vm1864_vm8, %v2115_v47, %v4961_v37  ;;  %1243 = vadd.xlane.f32.xlu0 %v1242_v35  ;;  %v1046_v9 = vpop.xlane.xlu1 %1045  ;;  %v924_v47 = vsel %vm740_vm0, %v3499_v30, 0.0 }
 0x14e   : > { %v1004_v16 = vpop.xlane.xlu0 %1003  ;;  %v2337_v34 = vrot.slane %v1046_v9, %v4699_v12  ;;  %v873_v9 = vsel %vm740_vm0, %v3466_v58, 0.0  ;;  %v5206_v58 = vld [vmem:[%s4350_s9 + $0x2a0] sm:$0xff]  }
 0x14f   : > { %v2268_v44 = vrot.slane %v1004_v16, %v4925_v36  ;;  %v3562_v16 = vunpack.c.l.bf16 %v5155_v63 }
 0x150   : > { %v5125_v37 = vsel %vm1843_vm5, %v2337_v34, %v4999_v45  ;;  %1387 = vadd.xlane.f32.xlu1 %v1386_v3  ;;  %v3527_v3 = vunpack.c.h.bf16 %v5025_v38 }
 0x151   : > { %v5129_v62 = vsel %vm1857_vm7, %v2268_v44, %v4978_v1  ;;  %1336 = vadd.xlane.f32.xlu0 %v1335_v49  ;;  %v1139_v29 = vpop.xlane.xlu1 %1138  ;;  %v1017_v38 = vsel %vm740_vm0, %v3562_v16, 0.0  ;;  %v5222_v16 = vld [vmem:[%s4350_s9 + $0x360] sm:$0xff]  }
 0x152   : > { %v1097_v17 = vpop.xlane.xlu0 %1096  ;;  %v2490_v45 = vrot.slane %v1139_v29, %v4623_v8  ;;  %v966_v29 = vsel %vm740_vm0, %v3527_v3, 0.0 }
 0x153   : > { %v2421_v15 = vrot.slane %v1097_v17, %v4808_v14  ;;  %v3623_v17 = vunpack.c.h.bf16 %v5042_v25 }
 0x154   : > { %v5142_v1 = vsel %vm1836_vm4, %v2490_v45, %v5016_v39  ;;  %1480 = vadd.xlane.f32.xlu1 %v1479_v24  ;;  %v3590_v24 = vunpack.c.l.bf16 %v5172_v42 }
 0x155   : > { %v5146_v50 = vsel %vm1850_vm6, %v2421_v15, %v4995_v27  ;;  %1429 = vadd.xlane.f32.xlu0 %v1428_v19  ;;  %v1232_v22 = vpop.xlane.xlu1 %1231  ;;  %v1110_v15 = vsel %vm740_vm0, %v3623_v17, 0.0 }
 0x156   : > { %v1190_v61 = vpop.xlane.xlu0 %1189  ;;  %v2643_v39 = vrot.slane %v1232_v22, %v4567_v5  ;;  %v1059_v25 = vsel %vm740_vm0, %v3590_v24, 0.0  ;;  %v3686_v22 = vunpack.c.l.bf16 %v5189_v20  ;;  %v5239_v24 = vld [vmem:[%s4350_s9 + $0x398] sm:$0xff]  }
 0x157   : > { %v2574_v35 = vrot.slane %v1190_v61, %v4699_v12  ;;  %v3651_v61 = vunpack.c.h.bf16 %v5054_v28 }
 0x158   : > { %v5159_v27 = vsel %vm1829_vm3, %v2643_v39, %v5033_v11  ;;  %829 = vadd.xlane.f32.xlu1 %v828_v40 }
 0x159   : > { %v5163_v57 = vsel %vm1843_vm5, %v2574_v35, %v5012_v10  ;;  %778 = vadd.xlane.f32.xlu0 %v777_v48  ;;  %v1325_v59 = vpop.xlane.xlu1 %1324 }
 0x15a   : > { %v1283_v53 = vpop.xlane.xlu0 %1282  ;;  %v2796_v11 = vrot.slane %v1325_v59, %v4529_v31  ;;  %v1152_v59 = vsel %vm740_vm0, %v3651_v61, 0.0  ;;  %v5256_v61 = vld [vmem:[%s4350_s9 + $0x78] sm:$0xff]  }
 0x15b   : > { %v2727_v49 = vrot.slane %v1283_v53, %v4623_v8  ;;  %v3747_v53 = vunpack.c.h.bf16 %v5071_v0 }
 0x15c   : > { %v5176_v10 = vsel %vm1822_vm2, %v2796_v11, %v5045_v13  ;;  %925 = vadd.xlane.f32.xlu1 %v924_v47  ;;  %v1866_v13 = vadd.s32 4294967224, %v4488_v55  ;;  %v3714_v47 = vunpack.c.l.bf16 %v5206_v58 }
 0x15d   : > { %v5180_v51 = vsel %vm1836_vm4, %v2727_v49, %v5029_v43  ;;  %874 = vadd.xlane.f32.xlu0 %v873_v9  ;;  %v1415_v34 = vpop.xlane.xlu1 %1414 }
 0x15e   : > { %v1376_v44 = vpop.xlane.xlu0 %1375  ;;  %v2945_v40 = vrot.slane %v1415_v34, %v4504_v6  ;;  %v1296_v34 = vsel %vm740_vm0, %v3747_v53, 0.0  ;;  %v5273_v53 = vld [vmem:[%s4350_s9 + $0xf8] sm:$0xff]  }
 0x15f   : > { %v2880_v19 = vrot.slane %v1376_v44, %v4567_v5  ;;  %v1245_v44 = vsel %vm740_vm0, %v3714_v47, 0.0 }
 0x160   : > { %1018 = vadd.xlane.f32.xlu1 %v1017_v38  ;;  %v3810_v38 = vunpack.c.l.bf16 %v5222_v16 }
 0x161   : > { %v5193_v43 = vsel %vm1829_vm3, %v2880_v19, %v5058_v46  ;;  %967 = vadd.xlane.f32.xlu0 %v966_v29  ;;  %v1469_v52 = vpop.xlane.xlu1 %1468  ;;  %v5203_v46 = vsub.s32 %v1866_v13, %v4492_v60  ;;  %v3775_v29 = vunpack.c.h.bf16 %v5087_v21 }
 0x162   : > { %v1418_v45 = vpop.xlane.xlu0 %1417  ;;  %v3033_v48 = vrot.slane %v1469_v52, %v4529_v31  ;;  %v1389_v21 = vsel %vm740_vm0, %v3810_v38, 0.0  ;;  %v5290_v38 = vld [vmem:[%s4350_s9 + $0x130] sm:$0xff]  }
 0x163   : > { %v2949_v30 = vrot.slane %v1418_v45, %v4507_v7  ;;  %v1203_v7 = vsel %vm740_vm0, %v3686_v22, 0.0  ;;  %v1338_v45 = vsel %vm740_vm0, %v3775_v29, 0.0 }
 0x164   : > { %v5210_v39 = vsel %vm1822_vm2, %v3033_v48, %v5078_v23  ;;  %1111 = vadd.xlane.f32.xlu1 %v1110_v15  ;;  %v3871_v15 = vunpack.c.h.bf16 %v5104_v41 }
 0x165   : > { %v5213_v35 = vsel %vm1815_vm1, %v2949_v30, %v2945_v40  ;;  %1060 = vadd.xlane.f32.xlu0 %v1059_v25  ;;  %v818_v6 = vpop.xlane.xlu1 %817  ;;  %v3838_v25 = vunpack.c.l.bf16 %v5239_v24  ;;  %vm3102_vm1 = vcmask 1042434  }
 0x166   : > { %v767_v28 = vpop.xlane.xlu0 %766  ;;  %v1962_v23 = vrot.slane %v818_v6, %v5203_v46  ;;  %v1482_v30 = vsel %vm740_vm0, %v3871_v15, 0.0  ;;  %v5307_v15 = vld [vmem:[%s4350_s9 + $0x1f0] sm:$0xff]  }
 0x167   : > { %v1863_v9 = vrot.slane %v767_v28, %v5068_v32  ;;  %v1431_v6 = vsel %vm740_vm0, %v3838_v25, 0.0  ;;  %v3438_v28 = vunpack.c.l.bf16 %v5256_v61 }
 0x168   : > { %v5226_v3 = vsel %vm1871_vm9, %v1962_v23, %v5095_v33  ;;  %1204 = vadd.xlane.f32.xlu1 %v1203_v7  ;;  %v3403_v7 = vunpack.c.h.bf16 %v5121_v56 }
 0x169   : > { %v5230_v11 = vsel %vm1864_vm8, %v1863_v9, %v5075_v4  ;;  %1153 = vadd.xlane.f32.xlu0 %v1152_v59  ;;  %v914_v0 = vpop.xlane.xlu1 %913  ;;  %v831_v56 = vsel %vm740_vm0, %v3438_v28, 0.0  ;;  %v5325_v28 = vld [vmem:[%s4350_s9 + $0x228] sm:$0xff]  }
 0x16a   : > { %v863_v49 = vpop.xlane.xlu0 %862  ;;  %v2120_v33 = vrot.slane %v914_v0, %v5203_v46  ;;  %v780_v0 = vsel %vm740_vm0, %v3403_v7, 0.0 }
 0x16b   : > { %v2036_v17 = vrot.slane %v863_v49, %v5068_v32  ;;  %v3502_v49 = vunpack.c.l.bf16 %v5273_v53 }
 0x16c   : > { %v5243_v4 = vsel %vm1871_vm9, %v2120_v33, %v5112_v26  ;;  %1297 = vadd.xlane.f32.xlu1 %v1296_v34  ;;  %v3467_v34 = vunpack.c.h.bf16 %v5138_v18 }
 0x16d   : > { %v5247_v19 = vsel %vm1864_vm8, %v2036_v17, %v5091_v2  ;;  %1246 = vadd.xlane.f32.xlu0 %v1245_v44  ;;  %v1007_v13 = vpop.xlane.xlu1 %1006  ;;  %v927_v18 = vsel %vm740_vm0, %v3502_v49, 0.0 }
 0x16e   : > { %v956_v52 = vpop.xlane.xlu0 %955  ;;  %v2273_v26 = vrot.slane %v1007_v13, %v5068_v32  ;;  %v876_v13 = vsel %vm740_vm0, %v3467_v34, 0.0  ;;  %v5345_v34 = vld [vmem:[%s4350_s9 + $0x2e8] sm:$0xff]  }
 0x16f   : > { %v2189_v22 = vrot.slane %v956_v52, %v4925_v36  ;;  %v3563_v52 = vunpack.c.h.bf16 %v5155_v63 }
 0x170   : > { %v5260_v2 = vsel %vm1864_vm8, %v2273_v26, %v5129_v62  ;;  %1390 = vadd.xlane.f32.xlu1 %v1389_v21  ;;  %v3530_v21 = vunpack.c.l.bf16 %v5290_v38 }
 0x171   : > { %v5264_v40 = vsel %vm1857_vm7, %v2189_v22, %v5108_v54  ;;  %1339 = vadd.xlane.f32.xlu0 %v1338_v45  ;;  %v1100_v41 = vpop.xlane.xlu1 %1099  ;;  %v1020_v22 = vsel %vm740_vm0, %v3563_v52, 0.0 }
 0x172   : > { %v1049_v48 = vpop.xlane.xlu0 %1048  ;;  %v2426_v62 = vrot.slane %v1100_v41, %v4925_v36  ;;  %v969_v41 = vsel %vm740_vm0, %v3530_v21, 0.0 }
 0x173   : > { %v2342_v59 = vrot.slane %v1049_v48, %v4808_v14  ;;  %v3626_v48 = vunpack.c.l.bf16 %v5307_v15 }
 0x174   : > { %v5277_v54 = vsel %vm1857_vm7, %v2426_v62, %v5146_v50  ;;  %1483 = vadd.xlane.f32.xlu1 %v1482_v30  ;;  %v3591_v30 = vunpack.c.h.bf16 %v5172_v42 }
 0x175   : > { %v5281_v47 = vsel %vm1850_vm6, %v2342_v59, %v5125_v37  ;;  %1432 = vadd.xlane.f32.xlu0 %v1431_v6  ;;  %v1193_v23 = vpop.xlane.xlu1 %1192 }
 0x176   : > { %v1142_v9 = vpop.xlane.xlu0 %1141  ;;  %v2579_v50 = vrot.slane %v1193_v23, %v4808_v14  ;;  %v1113_v23 = vsel %vm740_vm0, %v3626_v48, 0.0 }
 0x177   : > { %v2495_v44 = vrot.slane %v1142_v9, %v4699_v12  ;;  %v1062_v9 = vsel %vm740_vm0, %v3591_v30, 0.0  ;;  %v5379_v30 = vld [vmem:[%s4350_s9 + $0x3e0] sm:$0xff]  }
 0x178   : > { %v5294_v37 = vsel %vm1850_vm6, %v2579_v50, %v5163_v57  ;;  %832 = vadd.xlane.f32.xlu1 %v831_v56  ;;  %v3687_v56 = vunpack.c.h.bf16 %v5189_v20 }
 0x179   : > { %v5298_v29 = vsel %vm1843_vm5, %v2495_v44, %v5142_v1  ;;  %781 = vadd.xlane.f32.xlu0 %v780_v0  ;;  %v1286_v33 = vpop.xlane.xlu1 %1285  ;;  %v3654_v0 = vunpack.c.l.bf16 %v5325_v28 }
 0x17a   : > { %v1235_v17 = vpop.xlane.xlu0 %1234  ;;  %v2732_v45 = vrot.slane %v1286_v33, %v4699_v12 }
 0x17b   : > { %v2648_v57 = vrot.slane %v1235_v17, %v4623_v8  ;;  %v1155_v17 = vsel %vm740_vm0, %v3654_v0, 0.0 }
 0x17c   : > { %v5311_v1 = vsel %vm1843_vm5, %v2732_v45, %v5180_v51  ;;  %928 = vadd.xlane.f32.xlu1 %v927_v18  ;;  %v3750_v18 = vunpack.c.l.bf16 %v5345_v34 }
 0x17d   : > { %v5315_v25 = vsel %vm1836_vm4, %v2648_v57, %v5159_v27  ;;  %877 = vadd.xlane.f32.xlu0 %v876_v13  ;;  %v1379_v63 = vpop.xlane.xlu1 %1378  ;;  %v1873_v27 = vadd.s32 4294967216, %v4488_v55  ;;  %v3715_v13 = vunpack.c.h.bf16 %v5206_v58 }
 0x17e   : > { %v1328_v26 = vpop.xlane.xlu0 %1327  ;;  %v2885_v6 = vrot.slane %v1379_v63, %v4623_v8  ;;  %v1299_v58 = vsel %vm740_vm0, %v3750_v18, 0.0  ;;  %v5413_v18 = vld [vmem:[%s4350_s9 + $0xb8] sm:$0xff]  }
 0x17f   : > { %v2801_v51 = vrot.slane %v1328_v26, %v4567_v5  ;;  %v1248_v26 = vsel %vm740_vm0, %v3715_v13, 0.0 }
 0x180   : > { %v5329_v7 = vsel %vm1836_vm4, %v2885_v6, %v5193_v43  ;;  %1021 = vadd.xlane.f32.xlu1 %v1020_v22  ;;  %v3811_v22 = vunpack.c.h.bf16 %v5222_v16 }
 0x181   : > { %v5333_v62 = vsel %vm1829_vm3, %v2801_v51, %v5176_v10  ;;  %970 = vadd.xlane.f32.xlu0 %v969_v41  ;;  %v1472_v42 = vpop.xlane.xlu1 %1471  ;;  %v5342_v10 = vsub.s32 %v1873_v27, %v4492_v60 }
 0x182   : > { %v1421_v59 = vpop.xlane.xlu0 %1420  ;;  %v3038_v49 = vrot.slane %v1472_v42, %v4567_v5  ;;  %v1392_v27 = vsel %vm740_vm0, %v3811_v22, 0.0  ;;  %v5430_v22 = vld [vmem:[%s4350_s9 + $0x178] sm:$0xff]  }
 0x183   : > { %v2954_v43 = vrot.slane %v1421_v59, %v4529_v31  ;;  %v1206_v31 = vsel %vm740_vm0, %v3687_v56, 0.0  ;;  %v3874_v59 = vunpack.c.l.bf16 %v5379_v30  ;;  %v5396_v56 = vld [vmem:[%s4350_s9 + $0x38] sm:$0xff]  }
 0x184   : > { %v5349_v50 = vsel %vm1829_vm3, %v3038_v49, %v5210_v39  ;;  %1114 = vadd.xlane.f32.xlu1 %v1113_v23  ;;  %v3839_v23 = vunpack.c.h.bf16 %v5239_v24 }
 0x185   : > { %v5353_v44 = vsel %vm1822_vm2, %v2954_v43, %v5213_v35  ;;  %1063 = vadd.xlane.f32.xlu0 %v1062_v9  ;;  %v821_v20 = vpop.xlane.xlu1 %820  ;;  %v5362_v35 = vld [vmem:[%s4350_s9 + $0x320] sm:$0xff]   ;;  %v1485_v24 = vsel %vm740_vm0, %v3874_v59, 0.0  ;;  %v5447_v59 = vld [vmem:[%s4350_s9 + $0x1b0] sm:$0xff]   ;;  %vm3104_vm2 = vcmask 1043459  }
 0x186   : > { %v770_v33 = vpop.xlane.xlu0 %769  ;;  %v1967_v39 = vrot.slane %v821_v20, %v5342_v10  ;;  %v3778_v41 = vunpack.c.l.bf16 %v5362_v35  ;;  %v1434_v20 = vsel %vm740_vm0, %v3839_v23, 0.0 }
 0x187   : > { %v1870_v52 = vrot.slane %v770_v33, %v5203_v46  ;;  %v3439_v33 = vunpack.c.h.bf16 %v5256_v61 }
 0x188   : > { %v5366_v21 = vsel %vm1878_vm10, %v1967_v39, %v5226_v3  ;;  %1207 = vadd.xlane.f32.xlu1 %v1206_v31  ;;  %v1341_v42 = vsel %vm740_vm0, %v3778_v41, 0.0  ;;  %v3406_v31 = vunpack.c.l.bf16 %v5396_v56 }
 0x189   : > { %v5370_v45 = vsel %vm1871_vm9, %v1870_v52, %v5230_v11  ;;  %1156 = vadd.xlane.f32.xlu0 %v1155_v17  ;;  %v917_v57 = vpop.xlane.xlu1 %916  ;;  %v834_v52 = vsel %vm740_vm0, %v3439_v33, 0.0  ;;  %v5465_v33 = vld [vmem:[%s4350_s9 + $0x270] sm:$0xff]  }
 0x18a   : > { %v866_v63 = vpop.xlane.xlu0 %865  ;;  %v2125_v3 = vrot.slane %v917_v57, %v5342_v10  ;;  %v783_v57 = vsel %vm740_vm0, %v3406_v31, 0.0 }
 0x18b   : > { %v2041_v48 = vrot.slane %v866_v63, %v5203_v46  ;;  %v3503_v63 = vunpack.c.h.bf16 %v5273_v53 }
 0x18c   : > { %v5383_v11 = vsel %vm1878_vm10, %v2125_v3, %v5243_v4  ;;  %1300 = vadd.xlane.f32.xlu1 %v1299_v58  ;;  %v3470_v58 = vunpack.c.l.bf16 %v5413_v18 }
 0x18d   : > { %v5387_v6 = vsel %vm1871_vm9, %v2041_v48, %v5247_v19  ;;  %1249 = vadd.xlane.f32.xlu0 %v1248_v26  ;;  %v1010_v16 = vpop.xlane.xlu1 %1009  ;;  %v930_v48 = vsel %vm740_vm0, %v3503_v63, 0.0 }
 0x18e   : > { %v959_v51 = vpop.xlane.xlu0 %958  ;;  %v2278_v4 = vrot.slane %v1010_v16, %v5203_v46  ;;  %v879_v16 = vsel %vm740_vm0, %v3470_v58, 0.0  ;;  %v5485_v58 = vld [vmem:[%s4350_s9 + $0x2a8] sm:$0xff]  }
 0x18f   : > { %v2194_v9 = vrot.slane %v959_v51, %v5068_v32  ;;  %v3566_v51 = vunpack.c.l.bf16 %v5430_v22 }
 0x190   : > { %v5400_v19 = vsel %vm1871_vm9, %v2278_v4, %v5260_v2  ;;  %1393 = vadd.xlane.f32.xlu1 %v1392_v27  ;;  %v3531_v27 = vunpack.c.h.bf16 %v5290_v38 }
 0x191   : > { %v5404_v0 = vsel %vm1864_vm8, %v2194_v9, %v5264_v40  ;;  %1342 = vadd.xlane.f32.xlu0 %v1341_v42  ;;  %v1103_v49 = vpop.xlane.xlu1 %1102  ;;  %v1023_v38 = vsel %vm740_vm0, %v3566_v51, 0.0 }
 0x192   : > { %v1052_v43 = vpop.xlane.xlu0 %1051  ;;  %v2431_v2 = vrot.slane %v1103_v49, %v5068_v32  ;;  %v972_v49 = vsel %vm740_vm0, %v3531_v27, 0.0 }
 0x193   : > { %v2347_v17 = vrot.slane %v1052_v43, %v4925_v36  ;;  %v3627_v43 = vunpack.c.h.bf16 %v5307_v15 }
 0x194   : > { %v5417_v40 = vsel %vm1864_vm8, %v2431_v2, %v5277_v54  ;;  %1486 = vadd.xlane.f32.xlu1 %v1485_v24  ;;  %v3594_v24 = vunpack.c.l.bf16 %v5447_v59 }
 0x195   : > { %v5421_v13 = vsel %vm1857_vm7, %v2347_v17, %v5281_v47  ;;  %1435 = vadd.xlane.f32.xlu0 %v1434_v20  ;;  %v1196_v61 = vpop.xlane.xlu1 %1195 }
 0x196   : > { %v1145_v39 = vpop.xlane.xlu0 %1144  ;;  %v2584_v54 = vrot.slane %v1196_v61, %v4925_v36  ;;  %v1116_v61 = vsel %vm740_vm0, %v3627_v43, 0.0 }
 0x197   : > { %v2500_v26 = vrot.slane %v1145_v39, %v4808_v14  ;;  %v1065_v39 = vsel %vm740_vm0, %v3594_v24, 0.0  ;;  %v5519_v24 = vld [vmem:[%s4350_s9 + $0x3a0] sm:$0xff]  }
 0x198   : > { %v5434_v47 = vsel %vm1857_vm7, %v2584_v54, %v5294_v37  ;;  %835 = vadd.xlane.f32.xlu1 %v834_v52  ;;  %v3690_v52 = vunpack.c.l.bf16 %v5465_v33 }
 0x199   : > { %v5438_v41 = vsel %vm1850_vm6, %v2500_v26, %v5298_v29  ;;  %784 = vadd.xlane.f32.xlu0 %v783_v57  ;;  %v1289_v53 = vpop.xlane.xlu1 %1288  ;;  %v3655_v57 = vunpack.c.h.bf16 %v5325_v28 }
 0x19a   : > { %v1238_v3 = vpop.xlane.xlu0 %1237  ;;  %v2737_v42 = vrot.slane %v1289_v53, %v4808_v14 }
 0x19b   : > { %v2653_v37 = vrot.slane %v1238_v3, %v4699_v12  ;;  %v1158_v3 = vsel %vm740_vm0, %v3655_v57, 0.0 }
 0x19c   : > { %v5451_v29 = vsel %vm1850_vm6, %v2737_v42, %v5311_v1  ;;  %931 = vadd.xlane.f32.xlu1 %v930_v48  ;;  %v3751_v48 = vunpack.c.h.bf16 %v5345_v34 }
 0x19d   : > { %v5455_v23 = vsel %vm1843_vm5, %v2653_v37, %v5315_v25  ;;  %880 = vadd.xlane.f32.xlu0 %v879_v16  ;;  %v1382_v4 = vpop.xlane.xlu1 %1381  ;;  %v1880_v25 = vadd.s32 4294967208, %v4488_v55  ;;  %v3718_v16 = vunpack.c.l.bf16 %v5485_v58 }
 0x19e   : > { %v1331_v9 = vpop.xlane.xlu0 %1330  ;;  %v2890_v20 = vrot.slane %v1382_v4, %v4699_v12  ;;  %v1302_v4 = vsel %vm740_vm0, %v3751_v48, 0.0 }
 0x19f   : > { %v2806_v1 = vrot.slane %v1331_v9, %v4623_v8  ;;  %v1251_v9 = vsel %vm740_vm0, %v3718_v16, 0.0 }
 0x1a0   : > { %v5469_v31 = vsel %vm1843_vm5, %v2890_v20, %v5329_v7  ;;  %1024 = vadd.xlane.f32.xlu1 %v1023_v38 }
 0x1a1   : > { %v5473_v2 = vsel %vm1836_vm4, %v2806_v1, %v5333_v62  ;;  %973 = vadd.xlane.f32.xlu0 %v972_v49  ;;  %v1475_v15 = vpop.xlane.xlu1 %1474  ;;  %v5482_v62 = vsub.s32 %v1880_v25, %v4492_v60  ;;  %v3779_v49 = vunpack.c.h.bf16 %v5362_v35 }
 0x1a2   : > { %v1424_v17 = vpop.xlane.xlu0 %1423  ;;  %v3043_v63 = vrot.slane %v1475_v15, %v4623_v8 }
 0x1a3   : > { %v2959_v7 = vrot.slane %v1424_v17, %v4567_v5  ;;  %v1209_v5 = vsel %vm740_vm0, %v3690_v52, 0.0  ;;  %v1344_v15 = vsel %vm740_vm0, %v3779_v49, 0.0  ;;  %v3875_v17 = vunpack.c.h.bf16 %v5379_v30 }
 0x1a4   : > { %v5489_v54 = vsel %vm1836_vm4, %v3043_v63, %v5349_v50  ;;  %1117 = vadd.xlane.f32.xlu1 %v1116_v61  ;;  %v3842_v61 = vunpack.c.l.bf16 %v5519_v24 }
 0x1a5   : > { %v5493_v26 = vsel %vm1829_vm3, %v2959_v7, %v5353_v44  ;;  %1066 = vadd.xlane.f32.xlu0 %v1065_v39  ;;  %v824_v28 = vpop.xlane.xlu1 %823  ;;  %v5502_v44 = vld [vmem:[%s4350_s9 + $0x368] sm:$0xff]   ;;  %v1488_v30 = vsel %vm740_vm0, %v3875_v17, 0.0  ;;  %vm3106_vm3 = vcmask 1044484  }
 0x1a6   : > { %v773_v53 = vpop.xlane.xlu0 %772  ;;  %v1972_v50 = vrot.slane %v824_v28, %v5482_v62  ;;  %v3814_v38 = vunpack.c.l.bf16 %v5502_v44  ;;  %v1437_v7 = vsel %vm740_vm0, %v3842_v61, 0.0  ;;  %v3471_v28 = vunpack.c.h.bf16 %v5413_v18 }
 0x1a7   : > { %v1877_v51 = vrot.slane %v773_v53, %v5342_v10  ;;  %v3407_v53 = vunpack.c.h.bf16 %v5396_v56 }
 0x1a8   : > { %v5506_v27 = vsel %vm1885_vm11, %v1972_v50, %v5366_v21  ;;  %1210 = vadd.xlane.f32.xlu1 %v1209_v5  ;;  %v1395_v35 = vsel %vm740_vm0, %v3814_v38, 0.0  ;;  %v882_v56 = vsel %vm740_vm0, %v3471_v28, 0.0 }
 0x1a9   : > { %v5510_v42 = vsel %vm1878_vm10, %v1877_v51, %v5370_v45  ;;  %1159 = vadd.xlane.f32.xlu0 %v1158_v3  ;;  %v920_v34 = vpop.xlane.xlu1 %919  ;;  %v5550_v3 = vld [vmem:[%s4350_s9 + $0x138] sm:$0xff]   ;;  %v786_v50 = vsel %vm740_vm0, %v3407_v53, 0.0  ;;  %v3567_v51 = vunpack.c.h.bf16 %v5430_v22 }
 0x1aa   : > { %v869_v37 = vpop.xlane.xlu0 %868  ;;  %v2130_v43 = vrot.slane %v920_v34, %v5482_v62  ;;  %v3534_v34 = vunpack.c.l.bf16 %v5550_v3 }
 0x1ab   : > { %v2046_v21 = vrot.slane %v869_v37, %v5342_v10  ;;  %v1026_v49 = vsel %vm740_vm0, %v3567_v51, 0.0 }
 0x1ac   : > { %v5523_v45 = vsel %vm1885_vm11, %v2130_v43, %v5383_v11  ;;  %1303 = vadd.xlane.f32.xlu1 %v1302_v4  ;;  %v5567_v4 = vld [vmem:[%s4350_s9 + $0x1f8] sm:$0xff]   ;;  %v975_v43 = vsel %vm740_vm0, %v3534_v34, 0.0 }
 0x1ad   : > { %v5527_v20 = vsel %vm1878_vm10, %v2046_v21, %v5387_v6  ;;  %1252 = vadd.xlane.f32.xlu0 %v1251_v9  ;;  %v1013_v1 = vpop.xlane.xlu1 %1012  ;;  %v3630_v21 = vunpack.c.l.bf16 %v5567_v4 }
 0x1ae   : > { %v962_v25 = vpop.xlane.xlu0 %961  ;;  %v2283_v11 = vrot.slane %v1013_v1, %v5342_v10  ;;  %v3595_v1 = vunpack.c.h.bf16 %v5447_v59 }
 0x1af   : > { %v2199_v39 = vrot.slane %v962_v25, %v5203_v46  ;;  %v1119_v59 = vsel %vm740_vm0, %v3630_v21, 0.0 }
 0x1b0   : > { %v5537_v6 = vsel %vm1878_vm10, %v2283_v11, %v5400_v19  ;;  %1396 = vadd.xlane.f32.xlu1 %v1395_v35  ;;  %v5584_v35 = vld [vmem:[%s4350_s9 + $0x230] sm:$0xff]   ;;  %v1068_v11 = vsel %vm740_vm0, %v3595_v1, 0.0 }
 0x1b1   : > { %v5541_v52 = vsel %vm1871_vm9, %v2199_v39, %v5404_v0  ;;  %1345 = vadd.xlane.f32.xlu0 %v1344_v15  ;;  %v1106_v57 = vpop.xlane.xlu1 %1105  ;;  %v3691_v39 = vunpack.c.h.bf16 %v5465_v33 }
 0x1b2   : > { %v1055_v63 = vpop.xlane.xlu0 %1054  ;;  %v2436_v19 = vrot.slane %v1106_v57, %v5203_v46  ;;  %v3658_v57 = vunpack.c.l.bf16 %v5584_v35 }
 0x1b3   : > { %v2352_v5 = vrot.slane %v1055_v63, %v5068_v32 }
 0x1b4   : > { %v5554_v0 = vsel %vm1871_vm9, %v2436_v19, %v5417_v40  ;;  %1489 = vadd.xlane.f32.xlu1 %v1488_v30  ;;  %v5602_v30 = vld [vmem:[%s4350_s9 + $0x2f0] sm:$0xff]   ;;  %v1212_v19 = vsel %vm740_vm0, %v3691_v39, 0.0 }
 0x1b5   : > { %v5558_v48 = vsel %vm1864_vm8, %v2352_v5, %v5421_v13  ;;  %1438 = vadd.xlane.f32.xlu0 %v1437_v7  ;;  %v1199_v18 = vpop.xlane.xlu1 %1198  ;;  %v1161_v5 = vsel %vm740_vm0, %v3658_v57, 0.0 }
 0x1b6   : > { %v1148_v16 = vpop.xlane.xlu0 %1147  ;;  %v2589_v40 = vrot.slane %v1199_v18, %v5068_v32  ;;  %v3754_v18 = vunpack.c.l.bf16 %v5602_v30 }
 0x1b7   : > { %v2505_v37 = vrot.slane %v1148_v16, %v4925_v36  ;;  %v3719_v16 = vunpack.c.h.bf16 %v5485_v58 }
 0x1b8   : > { %v5571_v13 = vsel %vm1864_vm8, %v2589_v40, %v5434_v47  ;;  %883 = vadd.xlane.f32.xlu1 %v882_v56 }
 0x1b9   : > { %v5575_v9 = vsel %vm1857_vm7, %v2505_v37, %v5438_v41  ;;  %787 = vadd.xlane.f32.xlu0 %v786_v50  ;;  %v1292_v22 = vpop.xlane.xlu1 %1291  ;;  %v5622_v50 = vld [vmem:[%s4350_s9 + $0x328] sm:$0xff]   ;;  %v1254_v37 = vsel %vm740_vm0, %v3719_v16, 0.0 }
 0x1ba   : > { %v1241_v38 = vpop.xlane.xlu0 %1240  ;;  %v2742_v25 = vrot.slane %v1292_v22, %v4925_v36  ;;  %v3815_v22 = vunpack.c.h.bf16 %v5502_v44 }
 0x1bb   : > { %v2658_v47 = vrot.slane %v1241_v38, %v4808_v14  ;;  %v3782_v38 = vunpack.c.l.bf16 %v5622_v50 }
 0x1bc   : > { %v5588_v41 = vsel %vm1857_vm7, %v2742_v25, %v5451_v29  ;;  %1027 = vadd.xlane.f32.xlu1 %v1026_v49  ;;  %v1398_v25 = vsel %vm740_vm0, %v3815_v22, 0.0 }
 0x1bd   : > { %v5592_v15 = vsel %vm1850_vm6, %v2658_v47, %v5455_v23  ;;  %976 = vadd.xlane.f32.xlu0 %v975_v43  ;;  %v1385_v17 = vpop.xlane.xlu1 %1384  ;;  %v1887_v23 = vadd.s32 4294967200, %v4488_v55  ;;  %v1347_v47 = vsel %vm740_vm0, %v3782_v38, 0.0 }
 0x1be   : > { %v1334_v61 = vpop.xlane.xlu0 %1333  ;;  %v2895_v63 = vrot.slane %v1385_v17, %v4808_v14 }
 0x1bf   : > { %v2811_v29 = vrot.slane %v1334_v61, %v4699_v12  ;;  %v3843_v61 = vunpack.c.h.bf16 %v5519_v24 }
 0x1c0   : > { %v5606_v7 = vsel %vm1850_vm6, %v2895_v63, %v5469_v31  ;;  %1120 = vadd.xlane.f32.xlu1 %v1119_v59 }
 0x1c1   : > { %v5610_v28 = vsel %vm1843_vm5, %v2811_v29, %v5473_v2  ;;  %1069 = vadd.xlane.f32.xlu0 %v1068_v11  ;;  %v1478_v33 = vpop.xlane.xlu1 %1477  ;;  %v5619_v2 = vsub.s32 %v1887_v23, %v4492_v60  ;;  %v5656_v11 = vld [vmem:[%s4350_s9 + $0x1b8] sm:$0xff]   ;;  %v1440_v29 = vsel %vm740_vm0, %v3843_v61, 0.0 }
 0x1c2   : > { %v1427_v53 = vpop.xlane.xlu0 %1426  ;;  %v3048_v56 = vrot.slane %v1478_v33, %v4699_v12  ;;  %v3598_v23 = vunpack.c.l.bf16 %v5656_v11  ;;  %v3535_v33 = vunpack.c.h.bf16 %v5550_v3 }
 0x1c3   : > { %v2964_v31 = vrot.slane %v1427_v53, %v4623_v8  ;;  %v1305_v8 = vsel %vm740_vm0, %v3754_v18, 0.0 }
 0x1c4   : > { %v5626_v51 = vsel %vm1843_vm5, %v3048_v56, %v5489_v54  ;;  %1213 = vadd.xlane.f32.xlu1 %v1212_v19  ;;  %v1071_v16 = vsel %vm740_vm0, %v3598_v23, 0.0  ;;  %v978_v3 = vsel %vm740_vm0, %v3535_v33, 0.0  ;;  %v3659_v56 = vunpack.c.h.bf16 %v5584_v35 }
 0x1c5   : > { %v5630_v34 = vsel %vm1836_vm4, %v2964_v31, %v5493_v26  ;;  %1162 = vadd.xlane.f32.xlu0 %v1161_v5  ;;  %v827_v58 = vpop.xlane.xlu1 %826  ;;  %v5639_v26 = vld [vmem:[%s4350_s9 + $0x3e8] sm:$0xff]   ;;  %v3631_v31 = vunpack.c.h.bf16 %v5567_v4  ;;  %vm3108_vm4 = vcmask 1045509  }
 0x1c6   : > { %v776_v40 = vpop.xlane.xlu0 %775  ;;  %v1977_v54 = vrot.slane %v827_v58, %v5619_v2  ;;  %v3878_v17 = vunpack.c.l.bf16 %v5639_v26  ;;  %v1164_v22 = vsel %vm740_vm0, %v3659_v56, 0.0 }
 0x1c7   : > { %v1884_v49 = vrot.slane %v776_v40, %v5482_v62  ;;  %v5687_v40 = vld [vmem:[%s4350_s9 + $0x2b0] sm:$0xff]   ;;  %v1122_v38 = vsel %vm740_vm0, %v3631_v31, 0.0 }
 0x1c8   : > { %v5643_v43 = vsel %vm1892_vm12, %v1977_v54, %v5506_v27  ;;  %1306 = vadd.xlane.f32.xlu1 %v1305_v8  ;;  %v1491_v24 = vsel %vm740_vm0, %v3878_v17, 0.0  ;;  %v3722_v54 = vunpack.c.l.bf16 %v5687_v40 }
 0x1c9   : > { %v5647_v21 = vsel %vm1885_vm11, %v1884_v49, %v5510_v42  ;;  %1255 = vadd.xlane.f32.xlu0 %v1254_v37  ;;  %v923_v44 = vpop.xlane.xlu1 %922 }
 0x1ca   : > { %v872_v1 = vpop.xlane.xlu0 %871  ;;  %v2135_v59 = vrot.slane %v923_v44, %v5619_v2  ;;  %v1257_v17 = vsel %vm740_vm0, %v3722_v54, 0.0 }
 0x1cb   : > { %v2051_v27 = vrot.slane %v872_v1, %v5482_v62 }
 0x1cc   : > { %v5660_v42 = vsel %vm1892_vm12, %v2135_v59, %v5523_v45  ;;  %1399 = vadd.xlane.f32.xlu1 %v1398_v25  ;;  %v3783_v59 = vunpack.c.h.bf16 %v5622_v50 }
 0x1cd   : > { %v5664_v39 = vsel %vm1885_vm11, %v2051_v27, %v5527_v20  ;;  %1348 = vadd.xlane.f32.xlu0 %v1347_v47  ;;  %v1016_v57 = vpop.xlane.xlu1 %1015  ;;  %v3755_v27 = vunpack.c.h.bf16 %v5602_v30 }
 0x1ce   : > { %v965_v63 = vpop.xlane.xlu0 %964  ;;  %v2288_v45 = vrot.slane %v1016_v57, %v5482_v62  ;;  %v1350_v23 = vsel %vm740_vm0, %v3783_v59, 0.0 }
 0x1cf   : > { %v2204_v53 = vrot.slane %v965_v63, %v5342_v10  ;;  %v5721_v63 = vld [vmem:[%s4350_s9 + $0x3a8] sm:$0xff]   ;;  %v1308_v33 = vsel %vm740_vm0, %v3755_v27, 0.0 }
 0x1d0   : > { %v5674_v20 = vsel %vm1885_vm11, %v2288_v45, %v5537_v6  ;;  %1492 = vadd.xlane.f32.xlu1 %v1491_v24  ;;  %v3846_v45 = vunpack.c.l.bf16 %v5721_v63 }
 0x1d1   : > { %v5678_v19 = vsel %vm1878_vm10, %v2204_v53, %v5541_v52  ;;  %1441 = vadd.xlane.f32.xlu0 %v1440_v29  ;;  %v1109_v5 = vpop.xlane.xlu1 %1108  ;;  %v5690_v52 = vld [vmem:[%s4350_s9 + $0x278] sm:$0xff]  }
 0x1d2   : > { %v1058_v18 = vpop.xlane.xlu0 %1057  ;;  %v2441_v58 = vrot.slane %v1109_v5, %v5342_v10  ;;  %v3694_v49 = vunpack.c.l.bf16 %v5690_v52  ;;  %v1443_v31 = vsel %vm740_vm0, %v3846_v45, 0.0 }
 0x1d3   : > { %v2357_v6 = vrot.slane %v1058_v18, %v5203_v46 }
 0x1d4   : > { %v5694_v8 = vsel %vm1878_vm10, %v2441_v58, %v5554_v0  ;;  %1072 = vadd.xlane.f32.xlu1 %v1071_v16  ;;  %v1215_v61 = vsel %vm740_vm0, %v3694_v49, 0.0 }
 0x1d5   : > { %v5698_v37 = vsel %vm1871_vm9, %v2357_v6, %v5558_v48  ;;  %979 = vadd.xlane.f32.xlu0 %v978_v3  ;;  %v1202_v35 = vpop.xlane.xlu1 %1201  ;;  %v3599_v6 = vunpack.c.h.bf16 %v5656_v11 }
 0x1d6   : > { %v1151_v4 = vpop.xlane.xlu0 %1150  ;;  %v2594_v0 = vrot.slane %v1202_v35, %v5203_v46  ;;  %v3879_v35 = vunpack.c.h.bf16 %v5639_v26 }
 0x1d7   : > { %v2510_v44 = vrot.slane %v1151_v4, %v5068_v32 }
 0x1d8   : > { %v5708_v48 = vsel %vm1871_vm9, %v2594_v0, %v5571_v13  ;;  %1165 = vadd.xlane.f32.xlu1 %v1164_v22  ;;  %v5759_v22 = vld [vmem:[%s4350_s9 + $0x238] sm:$0xff]   ;;  %v1494_v49 = vsel %vm740_vm0, %v3879_v35, 0.0  ;;  %v3695_v0 = vunpack.c.h.bf16 %v5690_v52 }
 0x1d9   : > { %v5712_v1 = vsel %vm1864_vm8, %v2510_v44, %v5575_v9  ;;  %1123 = vadd.xlane.f32.xlu0 %v1122_v38  ;;  %v1295_v25 = vpop.xlane.xlu1 %1294  ;;  %v5724_v9 = vld [vmem:[%s4350_s9 + $0x370] sm:$0xff]   ;;  %v3662_v44 = vunpack.c.l.bf16 %v5759_v22 }
 0x1da   : > { %v1244_v47 = vpop.xlane.xlu0 %1243  ;;  %v2747_v57 = vrot.slane %v1295_v25, %v5068_v32  ;;  %v3818_v53 = vunpack.c.l.bf16 %v5724_v9  ;;  %v1218_v59 = vsel %vm740_vm0, %v3695_v0, 0.0 }
 0x1db   : > { %v2663_v13 = vrot.slane %v1244_v47, %v4925_v36  ;;  %v1167_v27 = vsel %vm740_vm0, %v3662_v44, 0.0 }
 0x1dc   : > { %v5728_v24 = vsel %vm1864_vm8, %v2747_v57, %v5588_v41  ;;  %1258 = vadd.xlane.f32.xlu1 %v1257_v17  ;;  %v1401_v58 = vsel %vm740_vm0, %v3818_v53, 0.0 }
 0x1dd   : > { %v5732_v29 = vsel %vm1857_vm7, %v2663_v13, %v5592_v15  ;;  %1216 = vadd.xlane.f32.xlu0 %v1215_v61  ;;  %v1388_v50 = vpop.xlane.xlu1 %1387  ;;  %v1894_v15 = vadd.s32 4294967192, %v4488_v55  ;;  %v3723_v13 = vunpack.c.h.bf16 %v5687_v40 }
 0x1de   : > { %v1337_v30 = vpop.xlane.xlu0 %1336  ;;  %v2900_v5 = vrot.slane %v1388_v50, %v4925_v36 }
 0x1df   : > { %v2816_v41 = vrot.slane %v1337_v30, %v4808_v14  ;;  %v3989_v30 = vld [vmem:[%s4350_s9 + $0x330] sm:$0xff]   ;;  %v1260_v53 = vsel %vm740_vm0, %v3723_v13, 0.0 }
 0x1e0   : > { %v5743_v18 = vsel %vm1857_vm7, %v2900_v5, %v5606_v7  ;;  %1351 = vadd.xlane.f32.xlu1 %v1350_v23  ;;  %v3819_v5 = vunpack.c.h.bf16 %v5724_v9 }
 0x1e1   : > { %v5747_v16 = vsel %vm1850_vm6, %v2816_v41, %v5610_v28  ;;  %1309 = vadd.xlane.f32.xlu0 %v1308_v33  ;;  %v1481_v3 = vpop.xlane.xlu1 %1480  ;;  %v5756_v28 = vsub.s32 %v1894_v15, %v4492_v60  ;;  %v3786_v41 = vunpack.c.l.bf16 %v3989_v30 }
 0x1e2   : > { %v1430_v56 = vpop.xlane.xlu0 %1429  ;;  %v3053_v4 = vrot.slane %v1481_v3, %v4808_v14  ;;  %v5807_v3 = vld [vmem:[%s4350_s9 + $0x3f0] sm:$0xff]  }
 0x1e3   : > { %v2969_v7 = vrot.slane %v1430_v56, %v4699_v12  ;;  %v1074_v12 = vsel %vm740_vm0, %v3599_v6, 0.0  ;;  %v1353_v6 = vsel %vm740_vm0, %v3786_v41, 0.0  ;;  %v3882_v35 = vunpack.c.l.bf16 %v5807_v3 }
 0x1e4   : > { %v5763_v38 = vsel %vm1850_vm6, %v3053_v4, %v5626_v51  ;;  %1444 = vadd.xlane.f32.xlu1 %v1443_v31  ;;  %v3847_v4 = vunpack.c.h.bf16 %v5721_v63 }
 0x1e5   : > { %v5767_v54 = vsel %vm1843_vm5, %v2969_v7, %v5630_v34  ;;  %1402 = vadd.xlane.f32.xlu0 %v1401_v58  ;;  %v830_v26 = vpop.xlane.xlu1 %829  ;;  %v5776_v34 = vld [vmem:[%s4350_s9 + $0x2f8] sm:$0xff]   ;;  %v1404_v58 = vsel %vm740_vm0, %v3819_v5, 0.0  ;;  %v1497_v63 = vsel %vm740_vm0, %v3882_v35, 0.0  ;;  %vm3110_vm5 = vcmask 1046534  }
 0x1e6   : > { %v779_v11 = vpop.xlane.xlu0 %778  ;;  %v1982_v51 = vrot.slane %v830_v26, %v5756_v28  ;;  %v3758_v57 = vunpack.c.l.bf16 %v5776_v34  ;;  %v5824_v26 = vld [vmem:[%s4350_s9 + $0x2b8] sm:$0xff]   ;;  %v1446_v0 = vsel %vm740_vm0, %v3847_v4, 0.0  ;;  %v3759_v13 = vunpack.c.h.bf16 %v5776_v34 }
 0x1e7   : > { %v1891_v25 = vrot.slane %v779_v11, %v5619_v2  ;;  %v3726_v44 = vunpack.c.l.bf16 %v5824_v26  ;;  %v3727_v4 = vunpack.c.h.bf16 %v5824_v26 }
 0x1e8   : > { %v5780_v47 = vsel %vm1899_vm13, %v1982_v51, %v5643_v43  ;;  %1075 = vadd.xlane.f32.xlu1 %v1074_v12  ;;  %v1311_v40 = vsel %vm740_vm0, %v3758_v57, 0.0  ;;  %v3663_v51 = vunpack.c.h.bf16 %v5759_v22  ;;  %v3787_v57 = vunpack.c.h.bf16 %v3989_v30 }
 0x1e9   : > { %v5784_v17 = vsel %vm1892_vm12, %v1891_v25, %v5647_v21  ;;  %1495 = vadd.xlane.f32.xlu0 %v1494_v49  ;;  %v926_v52 = vpop.xlane.xlu1 %925 }
 0x1ea   : > { %v875_v61 = vpop.xlane.xlu0 %874  ;;  %v2140_v43 = vrot.slane %v926_v52, %v5756_v28  ;;  %v1170_v22 = vsel %vm740_vm0, %v3663_v51, 0.0  ;;  %v1356_v34 = vsel %vm740_vm0, %v3787_v57, 0.0 }
 0x1eb   : > { %v2056_v50 = vrot.slane %v875_v61, %v5619_v2 }
 0x1ec   : > { %v5795_v21 = vsel %vm1899_vm13, %v2140_v43, %v5660_v42  ;;  %1219 = vadd.xlane.f32.xlu1 %v1218_v59 }
 0x1ed   : > { %v5799_v23 = vsel %vm1892_vm12, %v2056_v50, %v5664_v39  ;;  %1168 = vadd.xlane.f32.xlu0 %v1167_v27  ;;  %v1019_v33 = vpop.xlane.xlu1 %1018  ;;  %v1263_v27 = vsel %vm740_vm0, %v3726_v44, 0.0  ;;  %v5854_v50 = vld [vmem:[%s4350_s9 + $0x3b0] sm:$0xff]  }
 0x1ee   : > { %v968_v45 = vpop.xlane.xlu0 %967  ;;  %v2293_v15 = vrot.slane %v1019_v33, %v5619_v2  ;;  %v3998_v33 = vld [vmem:[%s4350_s9 + $0x378] sm:$0xff]   ;;  %v3850_v5 = vunpack.c.l.bf16 %v5854_v50 }
 0x1ef   : > { %v2209_v42 = vrot.slane %v968_v45, %v5482_v62  ;;  %v3822_v41 = vunpack.c.l.bf16 %v3998_v33 }
 0x1f0   : > { %v5811_v39 = vsel %vm1892_vm12, %v2293_v15, %v5674_v20  ;;  %1312 = vadd.xlane.f32.xlu1 %v1311_v40 }
 0x1f1   : > { %v5815_v56 = vsel %vm1885_vm11, %v2209_v42, %v5678_v19  ;;  %1261 = vadd.xlane.f32.xlu0 %v1260_v53  ;;  %v1112_v31 = vpop.xlane.xlu1 %1111  ;;  %v1314_v53 = vsel %vm740_vm0, %v3759_v13, 0.0  ;;  %v1901_v42 = vadd.s32 4294967184, %v4488_v55  ;;  %v1407_v35 = vsel %vm740_vm0, %v3822_v41, 0.0 }
 0x1f2   : > { %v1061_v9 = vpop.xlane.xlu0 %1060  ;;  %v2446_v7 = vrot.slane %v1112_v31, %v5482_v62 }
 0x1f3   : > { %v2362_v20 = vrot.slane %v1061_v9, %v5342_v10 }
 0x1f4   : > { %v5828_v19 = vsel %vm1885_vm11, %v2446_v7, %v5694_v8  ;;  %1405 = vadd.xlane.f32.xlu1 %v1404_v58  ;;  %v3883_v7 = vunpack.c.h.bf16 %v5807_v3  ;;  %v3823_v3 = vunpack.c.h.bf16 %v3998_v33 }
 0x1f5   : > { %v5832_v11 = vsel %vm1878_vm10, %v2362_v20, %v5698_v37  ;;  %1354 = vadd.xlane.f32.xlu0 %v1353_v6  ;;  %v1205_v12 = vpop.xlane.xlu1 %1204  ;;  %v1449_v6 = vsel %vm740_vm0, %v3850_v5, 0.0 }
 0x1f6   : > { %v1154_v49 = vpop.xlane.xlu0 %1153  ;;  %v2599_v8 = vrot.slane %v1205_v12, %v5342_v10  ;;  %v5889_v12 = vld [vmem:[%s4350_s9 + $0x338] sm:$0xff]   ;;  %v1500_v44 = vsel %vm740_vm0, %v3883_v7, 0.0 }
 0x1f7   : > { %v2515_v25 = vrot.slane %v1154_v49, %v5203_v46  ;;  %v3790_v51 = vunpack.c.l.bf16 %v5889_v12  ;;  %v1512_v7 = vld [vmem:[%s6416_s1 + $0x18] sm:$0xff] }
 0x1f8   : > { %v5842_v37 = vsel %vm1878_vm10, %v2599_v8, %v5708_v48  ;;  %1498 = vadd.xlane.f32.xlu1 %v1497_v63 }
 0x1f9   : > { %v5846_v52 = vsel %vm1871_vm9, %v2515_v25, %v5712_v1  ;;  %1447 = vadd.xlane.f32.xlu0 %v1446_v0  ;;  %v1298_v61 = vpop.xlane.xlu1 %1297  ;;  %v1266_v0 = vsel %vm740_vm0, %v3727_v4, 0.0  ;;  %v5905_v25 = vld [vmem:[%s4350_s9 + $0x3f8] sm:$0xff]   ;;  %v1511_v4 = vld [vmem:[%s6416_s1 + $0x10] sm:$0xff] }
 0x1fa   : > { %v1247_v59 = vpop.xlane.xlu0 %1246  ;;  %v2752_v43 = vrot.slane %v1298_v61, %v5203_v46 }
 0x1fb   : > { %v2668_v48 = vrot.slane %v1247_v59, %v5068_v32  ;;  %v1410_v59 = vsel %vm740_vm0, %v3823_v3, 0.0  ;;  %v4108_v3 = vpack.c.bf16 %v1512_v7, %v1511_v4 }
 0x1fc   : > { %v5859_v1 = vsel %vm1871_vm9, %v2752_v43, %v5728_v24  ;;  %1264 = vadd.xlane.f32.xlu1 %v1263_v27  ;;  %v1525_v27 = vld [vmem:[%s6416_s1 + $0x80] sm:$0xff]  ;;  %v3886_v43 = vunpack.c.l.bf16 %v5905_v25 }
 0x1fd   : > { %v5863_v45 = vsel %vm1864_vm8, %v2668_v48, %v5732_v29  ;;  %1171 = vadd.xlane.f32.xlu0 %v1170_v22  ;;  %v1391_v30 = vpop.xlane.xlu1 %1390  ;;  %v1526_v22 = vld [vmem:[%s6416_s1 + $0x88] sm:$0xff]  ;;  %v4006_v48 = vld [vmem:[%s4350_s9 + $0x3b8] sm:$0xff]   ;;  %s4206_s9 = scalar_lea.vmem %s4205_s8, 256 }
 0x1fe   : > { %v1340_v40 = vpop.xlane.xlu0 %1339  ;;  %v2905_v15 = vrot.slane %v1391_v30, %v5068_v32  ;;  %v4102_v33 = vpack.c.bf16 %v1526_v22, %v1525_v27  ;;  %v1509_v30 = vld [vmem:[%s6416_s1] sm:$0xff]  ;;  %v1514_v22 = vld [vmem:[%s6416_s1 + $0x28] sm:$0xff]  ;;  %p4208_p1 = scmp.lt.s32.totalorder %s4206_s9, %s4200_s7 }
 0x1ff   : > { %v2821_v24 = vrot.slane %v1340_v40, %v4925_v36  ;;  %v1510_v40 = vld [vmem:[%s6416_s1 + $0x8] sm:$0xff]  ;;  %v1513_v27 = vld [vmem:[%s6416_s1 + $0x20] sm:$0xff] }
 0x200   : > { %v5873_v29 = vsel %vm1864_vm8, %v2905_v15, %v5743_v18  ;;  %1357 = vadd.xlane.f32.xlu1 %v1356_v34  ;;  %v4104_v5 = vpack.c.bf16 %v1510_v40, %v1509_v30  ;;  %4103 = vmatprep.subr.bf16.mxu0 %v4102_v33  ;;  %v3854_v15 = vunpack.c.l.bf16 %v4006_v48  ;;  %p4209_p2 = por %p4208_p1, %p4207_p0 }
 0x201   : > { %v5877_v31 = vsel %vm1857_vm7, %v2821_v24, %v5747_v16  ;;  %1315 = vadd.xlane.f32.xlu0 %v1314_v53  ;;  %v1484_v9 = vpop.xlane.xlu1 %1483  ;;  %v5886_v16 = vsub.s32 %v1901_v42, %v4492_v60  ;;  %v1527_v24 = vld [vmem:[%s6416_s1 + $0x90] sm:$0xff]  ;;  %v1528_v42 = vld [vmem:[%s6416_s1 + $0x98] sm:$0xff] }
 0x202   : > { %v1433_v58 = vpop.xlane.xlu0 %1432  ;;  %v3058_v20 = vrot.slane %v1484_v9, %v4925_v36  ;;  %4105 = vmatpush3.bf16.msra.mxu0 %v4104_v5  ;;  %p4210_p3 = pnand %p4209_p2, %p4203_p13 }
 0x203   : > { %v2974_v18 = vrot.slane %v1433_v58, %v4808_v14 }
 0x204   : > { %v5893_v49 = vsel %vm1857_vm7, %v3058_v20, %v5763_v38  ;;  %1450 = vadd.xlane.f32.xlu1 %v1449_v6 }
 0x205   : > { %v5897_v63 = vsel %vm1850_vm6, %v2974_v18, %v5767_v54  ;;  %1408 = vadd.xlane.f32.xlu0 %v1407_v35  ;;  %v833_v26 = vpop.xlane.xlu1 %832  ;;  %v4106_v35 = vpack.c.bf16 %v1528_v42, %v1527_v24  ;;  %vm3112_vm6 = vcmask 1047559  }
 0x206   : > { %v782_v14 = vpop.xlane.xlu0 %781  ;;  %v1987_v38 = vrot.slane %v833_v26, %v5886_v16 }
 0x207   : > { %v1898_v8 = vrot.slane %v782_v14, %v5756_v28  ;;  %4107 = vmatprep.subr.bf16.mxu0 %v4106_v35  ;;  %v1455_v14 = vsel %vm740_vm0, %v3854_v15, 0.0 }
 0x208   : > { %v5909_v54 = vsel %vm1906_vm14, %v1987_v38, %v5780_v47  ;;  %1267 = vadd.xlane.f32.xlu1 %v1266_v0  ;;  %v1359_v47 = vsel %vm740_vm0, %v3790_v51, 0.0  ;;  %v1529_v0 = vld [vmem:[%s6416_s1 + $0xa0] sm:$0xff]  ;;  %4109 = vmatpush3.bf16.msra.mxu0 %v4108_v3 }
 0x209   : > { %v5913_v61 = vsel %vm1899_vm13, %v1898_v8, %v5784_v17  ;;  %1501 = vadd.xlane.f32.xlu0 %v1500_v44  ;;  %v929_v57 = vpop.xlane.xlu1 %928  ;;  %v3851_v17 = vunpack.c.h.bf16 %v5854_v50  ;;  %v1530_v44 = vld [vmem:[%s6416_s1 + $0xa8] sm:$0xff]  ;;  %v3855_v8 = vunpack.c.h.bf16 %v4006_v48  ;;  %v1532_v48 = vld [vmem:[%s6416_s1 + $0xb8] sm:$0xff] }
 0x20a   : > { %v878_v13 = vpop.xlane.xlu0 %877  ;;  %v2145_v34 = vrot.slane %v929_v57, %v5886_v16 }
 0x20b   : > { %v2061_v53 = vrot.slane %v878_v13, %v5756_v28  ;;  %v1452_v6 = vsel %vm740_vm0, %v3851_v17, 0.0  ;;  %v1531_v17 = vld [vmem:[%s6416_s1 + $0xb0] sm:$0xff]  ;;  %v1458_v40 = vsel %vm740_vm0, %v3855_v8, 0.0 }
 0x20c   : > { %v5936_v41 = vsel %vm1906_vm14, %v2145_v34, %v5795_v21  ;;  %1411 = vadd.xlane.f32.xlu1 %v1410_v59  ;;  %v1503_v21 = vsel %vm740_vm0, %v3886_v43, 0.0  ;;  %v4110_v59 = vpack.c.bf16 %v1530_v44, %v1529_v0  ;;  %v4114_v34 = vpack.c.bf16 %v1532_v48, %v1531_v17  ;;  %v1536_v0 = vld [vmem:[%s6416_s1 + $0xd8] sm:$0xff] }
 0x20d   : > { %v5940_v50 = vsel %vm1899_vm13, %v2061_v53, %v5799_v23  ;;  %1360 = vadd.xlane.f32.xlu0 %v1359_v47  ;;  %v1022_v9 = vpop.xlane.xlu1 %1021  ;;  %v3791_v23 = vunpack.c.h.bf16 %v5889_v12  ;;  %v4112_v47 = vpack.c.bf16 %v1514_v22, %v1513_v27  ;;  %v1516_v53 = vld [vmem:[%s6416_s1 + $0x38] sm:$0xff] }
 0x20e   : > { %v971_v58 = vpop.xlane.xlu0 %970  ;;  %v2298_v20 = vrot.slane %v1022_v9, %v5756_v28  ;;  %4111 = vmatprep.subr.bf16.mxu0 %v4110_v59 }
 0x20f   : > { %v2214_v18 = vrot.slane %v971_v58, %v5619_v2  ;;  %4113 = vmatpush3.bf16.msra.mxu0 %v4112_v47  ;;  %v1533_v58 = vld [vmem:[%s6416_s1 + $0xc0] sm:$0xff] }
 0x210   : > { %v5961_v26 = vsel %vm1899_vm13, %v2298_v20, %v5811_v39  ;;  %1504 = vadd.xlane.f32.xlu1 %v1503_v21  ;;  %v1362_v39 = vsel %vm740_vm0, %v3791_v23, 0.0  ;;  %4115 = vmatprep.subr.bf16.mxu0 %v4114_v34  ;;  %v1534_v21 = vld [vmem:[%s6416_s1 + $0xc8] sm:$0xff] }
 0x211   : > { %v5965_v12 = vsel %vm1892_vm12, %v2214_v18, %v5815_v56  ;;  %1453 = vadd.xlane.f32.xlu0 %v1452_v6  ;;  %v1115_v51 = vpop.xlane.xlu1 %1114  ;;  %v3887_v56 = vunpack.c.h.bf16 %v5905_v25  ;;  %v4118_v35 = vpack.c.bf16 %v1534_v21, %v1533_v58 }
 0x212   : > { %v1064_v38 = vpop.xlane.xlu0 %1063  ;;  %v2451_v57 = vrot.slane %v1115_v51, %v5619_v2 }
 0x213   : > { %v2367_v13 = vrot.slane %v1064_v38, %v5482_v62 }
 0x214   : > { %v5986_v43 = vsel %vm1892_vm12, %v2451_v57, %v5828_v19  ;;  %1456 = vadd.xlane.f32.xlu1 %v1455_v14  ;;  %v1506_v19 = vsel %vm740_vm0, %v3887_v56, 0.0  ;;  %v1535_v14 = vld [vmem:[%s6416_s1 + $0xd0] sm:$0xff]  ;;  %v1908_v56 = vadd.s32 4294967176, %v4488_v55  ;;  %v1537_v57 = vld [vmem:[%s6416_s1 + $0xe0] sm:$0xff]  ;;  %vm3100_vm0 = vcmask 1041409  }
 0x215   : > { %v5990_v25 = vsel %vm1885_vm11, %v2367_v13, %v5832_v11  ;;  %1363 = vadd.xlane.f32.xlu0 %v1362_v39  ;;  %v1208_v33 = vpop.xlane.xlu1 %1207  ;;  %v1515_v11 = vld [vmem:[%s6416_s1 + $0x30] sm:$0xff]  ;;  %v4122_v38 = vpack.c.bf16 %v1536_v0, %v1535_v14  ;;  %v1538_v13 = vld [vmem:[%s6416_s1 + $0xe8] sm:$0xff]  ;;  %v4264_v14 = vmov 0.0|0.0  }
 0x216   : > { %v1157_v30 = vpop.xlane.xlu0 %1156  ;;  %v2604_v5 = vrot.slane %v1208_v33, %v5482_v62  ;;  %v4116_v24 = vpack.c.bf16 %v1516_v53, %v1515_v11  ;;  %v4126_v17 = vpack.c.bf16 %v1538_v13, %v1537_v57  ;;  %v1539_v11 = vld [vmem:[%s6416_s1 + $0xf0] sm:$0xff]  ;;  %4134 = vmatprep.subr.bf16.mxu1 %v4264_v14 }
 0x217   : > { %v2520_v15 = vrot.slane %v1157_v30, %v5342_v10  ;;  %v6076_v30 = vsub.s32 %v1908_v56, %v4492_v60 }
 0x218   : > { %v6010_v42 = vsel %vm1885_vm11, %v2604_v5, %v5842_v37  ;;  %1459 = vadd.xlane.f32.xlu1 %v1458_v40  ;;  %4117 = vmatpush3.bf16.msra.mxu0 %v4116_v24  ;;  %v1517_v37 = vld [vmem:[%s6416_s1 + $0x40] sm:$0xff] }
 0x219   : > { %v6014_v9 = vsel %vm1878_vm10, %v2520_v15, %v5846_v52  ;;  %1507 = vadd.xlane.f32.xlu0 %v1506_v19  ;;  %v1301_v6 = vpop.xlane.xlu1 %1300  ;;  %v1518_v52 = vld [vmem:[%s6416_s1 + $0x48] sm:$0xff]  ;;  %4119 = vmatprep.subr.bf16.mxu0 %v4118_v35 }
 0x21a   : > { %v1250_v23 = vpop.xlane.xlu0 %1249  ;;  %v2757_v4 = vrot.slane %v1301_v6, %v5342_v10  ;;  %v4120_v20 = vpack.c.bf16 %v1518_v52, %v1517_v37 }
 0x21b   : > { %v2673_v7 = vrot.slane %v1250_v23, %v5203_v46 }
 0x21c   : > { %v6032_v18 = vsel %vm1878_vm10, %v2757_v4, %v5859_v1  ;;  %4121 = vmatpush3.bf16.msra.mxu0 %v4120_v20  ;;  %v1519_v1 = vld [vmem:[%s6416_s1 + $0x50] sm:$0xff]  ;;  %v3194_v4 = vld [vmem:[%s6418_s3] sm:$0xff] }
 0x21d   : > { %v6036_v3 = vsel %vm1871_vm9, %v2673_v7, %v5863_v45  ;;  %v1394_v44 = vpop.xlane.xlu1 %1393  ;;  %v1520_v45 = vld [vmem:[%s6416_s1 + $0x58] sm:$0xff]  ;;  %4123 = vmatprep.subr.bf16.mxu0 %v4122_v38 }
 0x21e   : > { %v1343_v51 = vpop.xlane.xlu0 %1342  ;;  %v2910_v39 = vrot.slane %v1394_v44, %v5203_v46  ;;  %v4124_v59 = vpack.c.bf16 %v1520_v45, %v1519_v1  ;;  %v3197_v44 = vld [vmem:[%s6418_s3 + $0x18] sm:$0xff] }
 0x21f   : > { %v2826_v8 = vrot.slane %v1343_v51, %v5068_v32 }
 0x220   : > { %v6055_v27 = vsel %vm1871_vm9, %v2910_v39, %v5873_v29  ;;  %4125 = vmatpush3.bf16.msra.mxu0 %v4124_v59  ;;  %v1521_v29 = vld [vmem:[%s6416_s1 + $0x60] sm:$0xff] }
 0x221   : > { %v6059_v22 = vsel %vm1864_vm8, %v2826_v8, %v5877_v31  ;;  %v1487_v47 = vpop.xlane.xlu1 %1486  ;;  %v1522_v31 = vld [vmem:[%s6416_s1 + $0x68] sm:$0xff]  ;;  %4127 = vmatprep.subr.bf16.mxu0 %v4126_v17  ;;  %v3198_v39 = vld [vmem:[%s6418_s3 + $0x20] sm:$0xff] }
 0x222   : > { %v1436_v55 = vpop.xlane.xlu0 %1435  ;;  %v3063_v48 = vrot.slane %v1487_v47, %v5068_v32  ;;  %v4128_v40 = vpack.c.bf16 %v1522_v31, %v1521_v29  ;;  %v3199_v8 = vld [vmem:[%s6418_s3 + $0x28] sm:$0xff]  ;;  %v3200_v29 = vld [vmem:[%s6418_s3 + $0x30] sm:$0xff] }
 0x223   : > { %v2979_v33 = vrot.slane %v1436_v55, %v4925_v36  ;;  %v1540_v36 = vld [vmem:[%s6416_s1 + $0xf8] sm:$0xff]  ;;  %v4141_v17 = vpack.c.bf16 %v3199_v8, %v3198_v39 }
 0x224   : > { %v6080_v19 = vsel %vm1864_vm8, %v3063_v48, %v5893_v49  ;;  %4129 = vmatpush3.bf16.msra.mxu0 %v4128_v40  ;;  %v4130_v5 = vpack.c.bf16 %v1540_v36, %v1539_v11  ;;  %v1523_v49 = vld [vmem:[%s6416_s1 + $0x70] sm:$0xff] }
 0x225   : > { %v6084_v34 = vsel %vm1857_vm7, %v2979_v33, %v5897_v63  ;;  %v836_v60 = vpop.xlane.xlu1 %835  ;;  %v1524_v63 = vld [vmem:[%s6416_s1 + $0x78] sm:$0xff]  ;;  %vm4265_vm7 = vmmov 0  }
 0x226   : > { %v785_v53 = vpop.xlane.xlu0 %784  ;;  %v1992_v15 = vrot.slane %v836_v60, %v6076_v30  ;;  %v4132_v58 = vpack.c.bf16 %v1524_v63, %v1523_v49  ;;  %4131 = vmatprep.subr.bf16.mxu0 %v4130_v5  ;;  %v3202_v60 = vld [vmem:[%s6418_s3 + $0x40] sm:$0xff] }
 0x227   : > { %v1905_v24 = vrot.slane %v785_v53, %v5886_v16 }
 0x228   : > { %v1993_v21 = vsel %vm1913_vm15, %v1992_v15, %v5909_v54  ;;  %4133 = vmatpush3.bf16.msra.mxu0 %v4132_v58  ;;  %v3195_v54 = vld [vmem:[%s6418_s3 + $0x8] sm:$0xff]  ;;  %v3204_v58 = vld [vmem:[%s6418_s3 + $0x50] sm:$0xff] }
 0x229   : > { %v6104_v6 = vsel %vm1906_vm14, %v1905_v24, %v5913_v61  ;;  %v932_v23 = vpop.xlane.xlu1 %931  ;;  %v3196_v61 = vld [vmem:[%s6418_s3 + $0x10] sm:$0xff]  ;;  %v4135_v0 = vpack.c.bf16 %v3195_v54, %v3194_v4 }
 0x22a   : > { %v881_v35 = vpop.xlane.xlu0 %880  ;;  %v2150_v37 = vrot.slane %v932_v23, %v6076_v30 }
 0x22b   : > { %v2066_v52 = vrot.slane %v881_v35, %v5886_v16  ;;  %4136 = vmatpush3.bf16.msra.mxu1 %v4135_v0 }
 0x22c   : > { %v2151_v7 = vsel %vm1913_vm15, %v2150_v37, %v5936_v41  ;;  %4137 = vmatprep.subr.bf16.mxu1 %v4264_v14 }
 0x22d   : > { %v6121_v20 = vsel %vm1906_vm14, %v2066_v52, %v5940_v50  ;;  %v6128_v51 = vsel %vm3100_vm0, %v2151_v7, %v1993_v21  ;;  %v1025_v38 = vpop.xlane.xlu1 %1024  ;;  %v4138_v50 = vpack.c.bf16 %v3197_v44, %v3196_v61 }
 0x22e   : > { %v974_v1 = vpop.xlane.xlu0 %973  ;;  %v2303_v45 = vrot.slane %v1025_v38, %v5886_v16 }
 0x22f   : > { %v2219_v41 = vrot.slane %v974_v1, %v5756_v28  ;;  %4139 = vmatpush3.bf16.msra.mxu1 %v4138_v50 }
 0x230   : > { %v6141_v56 = vsel %vm1906_vm14, %v2303_v45, %v5961_v26  ;;  %4140 = vmatprep.subr.bf16.mxu1 %v4264_v14  ;;  %v3201_v26 = vld [vmem:[%s6418_s3 + $0x38] sm:$0xff] }
 0x231   : > { %v6145_v59 = vsel %vm1899_vm13, %v2219_v41, %v5965_v12  ;;  %v1118_v57 = vpop.xlane.xlu1 %1117  ;;  %v4144_v36 = vpack.c.bf16 %v3201_v26, %v3200_v29 }
 0x232   : > { %v1067_v13 = vpop.xlane.xlu0 %1066  ;;  %v2456_v47 = vrot.slane %v1118_v57, %v5756_v28 }
 0x233   : > { %v2372_v55 = vrot.slane %v1067_v13, %v5619_v2  ;;  %4142 = vmatpush3.bf16.msra.mxu1 %v4141_v17 }
 0x234   : > { %v2457_v12 = vsel %vm1899_vm13, %v2456_v47, %v5986_v43  ;;  %4143 = vmatprep.subr.bf16.mxu1 %v4264_v14  ;;  %v3203_v43 = vld [vmem:[%s6418_s3 + $0x48] sm:$0xff] }
 0x235   : > { %v2373_v31 = vsel %vm1892_vm12, %v2372_v55, %v5990_v25  ;;  %v1211_v48 = vpop.xlane.xlu1 %1210  ;;  %v4147_v24 = vpack.c.bf16 %v3203_v43, %v3202_v60 }
 0x236   : > { %v1160_v33 = vpop.xlane.xlu0 %1159  ;;  %v2609_v40 = vrot.slane %v1211_v48, %v5619_v2 }
 0x237   : > { %v2525_v11 = vrot.slane %v1160_v33, %v5482_v62  ;;  %4145 = vmatpush3.bf16.msra.mxu1 %v4144_v36 }
 0x238   : > { %v2610_v25 = vsel %vm1892_vm12, %v2609_v40, %v6010_v42  ;;  %4146 = vmatprep.subr.bf16.mxu1 %v4264_v14  ;;  %v3205_v42 = vld [vmem:[%s6418_s3 + $0x58] sm:$0xff] }
 0x239   : > { %v2526_v53 = vsel %vm1885_vm11, %v2525_v11, %v6014_v9  ;;  %v1304_v5 = vpop.xlane.xlu1 %1303  ;;  %v4150_v4 = vpack.c.bf16 %v3205_v42, %v3204_v58 }
 0x23a   : > { %v1253_v49 = vpop.xlane.xlu0 %1252  ;;  %v2762_v63 = vrot.slane %v1304_v5, %v5482_v62 }
 0x23b   : > { %v2678_v15 = vrot.slane %v1253_v49, %v5342_v10  ;;  %4148 = vmatpush3.bf16.msra.mxu1 %v4147_v24 }
 0x23c   : > { %v2763_v9 = vsel %vm1885_vm11, %v2762_v63, %v6032_v18  ;;  %4149 = vmatprep.subr.bf16.mxu1 %v4264_v14 }
 0x23d   : > { %v2679_v21 = vsel %vm1878_vm10, %v2678_v15, %v6036_v3  ;;  %v1397_v23 = vpop.xlane.xlu1 %1396 }
 0x23e   : > { %v1346_v35 = vpop.xlane.xlu0 %1345  ;;  %v2915_v37 = vrot.slane %v1397_v23, %v5342_v10 }
 0x23f   : > { %v2831_v52 = vrot.slane %v1346_v35, %v5203_v46  ;;  %4151 = vmatpush3.bf16.msra.mxu1 %v4150_v4 }
 0x240   : > { %v2916_v54 = vsel %vm1878_vm10, %v2915_v37, %v6055_v27  ;;  %4152 = vmatprep.subr.bf16.mxu1 %v4264_v14 }
 0x241   : > { %v2832_v61 = vsel %vm1871_vm9, %v2831_v52, %v6059_v22  ;;  %v1490_v18 = vpop.xlane.xlu1 %1489 }
 0x242   : > { %v1439_v7 = vpop.xlane.xlu0 %1438  ;;  %v3068_v3 = vrot.slane %v1490_v18, %v5203_v46 }
 0x243   : > { %v2984_v0 = vrot.slane %v1439_v7, %v5068_v32 }
 0x244   : > { %v3069_v44 = vsel %vm1871_vm9, %v3068_v3, %v6080_v19 }
 0x245   : > { %v2985_v38 = vsel %vm1864_vm8, %v2984_v0, %v6084_v34  ;;  %v884_v1 = vpop.xlane.xlu1 %883 }
 0x246   : > { %v788_v27 = vpop.xlane.xlu0 %787  ;;  %v2071_v45 = vrot.slane %v884_v1, %v6076_v30 }
 0x247   : > { %v1912_v22 = vrot.slane %v788_v27, %v6076_v30 }
 0x248   : > { %v2072_v41 = vsel %vm1913_vm15, %v2071_v45, %v6121_v20 }
 0x249   : > { %v1914_v32 = vsel %vm1913_vm15, %v1912_v22, %v6104_v6  ;;  %v1028_v39 = vpop.xlane.xlu1 %1027 }
 0x24a   : > { %v3101_v50 = vsel %vm3100_vm0, %v2072_v41, %v1914_v32  ;;  %v977_v8 = vpop.xlane.xlu0 %976  ;;  %v2308_v19 = vrot.slane %v1028_v39, %v6076_v30 }
 0x24b   : > { %v2224_v34 = vrot.slane %v977_v8, %v5886_v16 }
 0x24c   : > { %v2309_v57 = vsel %vm1913_vm15, %v2308_v19, %v6141_v56 }
 0x24d   : > { %v2225_v13 = vsel %vm1906_vm14, %v2224_v34, %v6145_v59  ;;  %v3115_v20 = vsel %vm3102_vm1, %v2309_v57, %v6128_v51  ;;  %v1121_v47 = vpop.xlane.xlu1 %1120 }
 0x24e   : > { %v1070_v6 = vpop.xlane.xlu0 %1069  ;;  %v2461_v55 = vrot.slane %v1121_v47, %v5886_v16 }
 0x24f   : > { %v2377_v17 = vrot.slane %v1070_v6, %v5756_v28 }
 0x250   : > { %v2462_v29 = vsel %vm1906_vm14, %v2461_v55, %v2457_v12 }
 0x251   : > { %v2378_v26 = vsel %vm1899_vm13, %v2377_v17, %v2373_v31  ;;  %v1214_v48 = vpop.xlane.xlu1 %1213 }
 0x252   : > { %v1163_v33 = vpop.xlane.xlu0 %1162  ;;  %v2614_v56 = vrot.slane %v1214_v48, %v5756_v28 }
 0x253   : > { %v2530_v40 = vrot.slane %v1163_v33, %v5619_v2 }
 0x254   : > { %v2615_v59 = vsel %vm1899_vm13, %v2614_v56, %v2610_v25 }
 0x255   : > { %v2531_v51 = vsel %vm1892_vm12, %v2530_v40, %v2526_v53  ;;  %v1307_v11 = vpop.xlane.xlu1 %1306 }
 0x256   : > { %v1256_v36 = vpop.xlane.xlu0 %1255  ;;  %v2767_v60 = vrot.slane %v1307_v11, %v5619_v2 }
 0x257   : > { %v2683_v43 = vrot.slane %v1256_v36, %v5482_v62 }
 0x258   : > { %v6226_v12 = vsel %vm1892_vm12, %v2767_v60, %v2763_v9 }
 0x259   : > { %v6229_v31 = vsel %vm1885_vm11, %v2683_v43, %v2679_v21  ;;  %v1400_v5 = vpop.xlane.xlu1 %1399 }
 0x25a   : > { %v1349_v49 = vpop.xlane.xlu0 %1348  ;;  %v2920_v63 = vrot.slane %v1400_v5, %v5482_v62 }
 0x25b   : > { %v2836_v25 = vrot.slane %v1349_v49, %v5342_v10 }
 0x25c   : > { %v6234_v53 = vsel %vm1885_vm11, %v2920_v63, %v2916_v54 }
 0x25d   : > { %v6237_v15 = vsel %vm1878_vm10, %v2836_v25, %v2832_v61  ;;  %v1493_v24 = vpop.xlane.xlu1 %1492 }
 0x25e   : > { %v1442_v58 = vpop.xlane.xlu0 %1441  ;;  %v3073_v42 = vrot.slane %v1493_v24, %v5342_v10 }
 0x25f   : > { %v2989_v9 = vrot.slane %v1442_v58, %v5203_v46 }
 0x260   : > { %v6242_v21 = vsel %vm1878_vm10, %v3073_v42, %v3069_v44 }
 0x261   : > { %v6245_v23 = vsel %vm1871_vm9, %v2989_v9, %v2985_v38  ;;  %v1073_v35 = vpop.xlane.xlu1 %1072 }
 0x262   : > { %v980_v37 = vpop.xlane.xlu0 %979  ;;  %v2382_v22 = vrot.slane %v1073_v35, %v5886_v16 }
 0x263   : > { %v2229_v52 = vrot.slane %v980_v37, %v6076_v30 }
 0x264   : > { %v2383_v39 = vsel %vm1906_vm14, %v2382_v22, %v2378_v26 }
 0x265   : > { %v2230_v4 = vsel %vm1913_vm15, %v2229_v52, %v2225_v13  ;;  %v1166_v61 = vpop.xlane.xlu1 %1165 }
 0x266   : > { %v3103_v54 = vsel %vm3102_vm1, %v2230_v4, %v3101_v50  ;;  %v1124_v18 = vpop.xlane.xlu0 %1123  ;;  %v2535_v40 = vrot.slane %v1166_v61, %v5756_v28 }
 0x267   : > { %v2466_v7 = vrot.slane %v1124_v18, %v6076_v30 }
 0x269   : > { %v2467_v46 = vsel %vm1913_vm15, %v2466_v7, %v2462_v29  ;;  %v1259_v0 = vpop.xlane.xlu1 %1258 }
 0x26a   : > { %v3116_v3 = vsel %vm3104_vm2, %v2467_v46, %v3115_v20  ;;  %v1217_v44 = vpop.xlane.xlu0 %1216  ;;  %v2688_v52 = vrot.slane %v1259_v0, %v5619_v2 }
 0x26b   : > { %v2619_v8 = vrot.slane %v1217_v44, %v5886_v16 }
 0x26d   : > { %v6253_v38 = vpop.xlane.xlu1 %1351  ;;  %v2620_v47 = vsel %vm1906_vm14, %v2619_v8, %v2615_v59  ;;  %v2536_v59 = vsel %vm1899_vm13, %v2535_v40, %v2531_v51 }
 0x26e   : > { %v1310_v1 = vpop.xlane.xlu0 %1309 }
 0x26f   : > { %v2772_v43 = vrot.slane %v1310_v1, %v5756_v28 }
 0x271   : > { %v6255_v27 = vpop.xlane.xlu1 %1444  ;;  %v2773_v9 = vsel %vm1899_vm13, %v2772_v43, %v6226_v12  ;;  %v2689_v12 = vsel %vm1892_vm12, %v2688_v52, %v6229_v31 }
 0x272   : > { %v1403_v45 = vpop.xlane.xlu0 %1402 }
 0x273   : > { %v2925_v46 = vrot.slane %v1403_v45, %v5619_v2 }
 0x275   : > { %v1076_v41 = vpop.xlane.xlu1 %1075  ;;  %v2926_v8 = vsel %vm1892_vm12, %v2925_v46, %v6234_v53  ;;  %v3209_v46 = vld [vmem:[%s6418_s3 + $0x78] sm:$0xff] }
 0x276   : > { %v6258_v32 = vpop.xlane.xlu0 %1495  ;;  %v2387_v50 = vrot.slane %v1076_v41, %v6076_v30 }
 0x278   : > { %v2388_v19 = vsel %vm1913_vm15, %v2387_v50, %v2383_v39 }
 0x279   : > { %v3105_v34 = vsel %vm3104_vm2, %v2388_v19, %v3103_v54  ;;  %v1220_v57 = vpop.xlane.xlu1 %1219 }
 0x27a   : > { %v1169_v13 = vpop.xlane.xlu0 %1168  ;;  %v2624_v20 = vrot.slane %v1220_v57, %v6076_v30 }
 0x27b   : > { %v2540_v11 = vrot.slane %v1169_v13, %v5886_v16 }
 0x27c   : > { %v2625_v6 = vsel %vm1913_vm15, %v2624_v20, %v2620_v47  ;;  %v2841_v20 = vrot.slane %v6253_v38, %v5482_v62  ;;  %v3078_v38 = vrot.slane %v6258_v32, %v5482_v62 }
 0x27d   : > { %v1313_v55 = vpop.xlane.xlu1 %1312  ;;  %v3117_v29 = vsel %vm3106_vm3, %v2625_v6, %v3116_v3  ;;  %v2541_v49 = vsel %vm1906_vm14, %v2540_v11, %v2536_v59 }
 0x27e   : > { %v1262_v17 = vpop.xlane.xlu0 %1261  ;;  %v2777_v63 = vrot.slane %v1313_v55, %v5886_v16  ;;  %v2842_v11 = vsel %vm1885_vm11, %v2841_v20, %v6237_v15 }
 0x27f   : > { %v2693_v18 = vrot.slane %v1262_v17, %v5756_v28 }
 0x280   : > { %v2778_v51 = vsel %vm1906_vm14, %v2777_v63, %v2773_v9 }
 0x281   : > { %v1406_v26 = vpop.xlane.xlu1 %1405  ;;  %v2694_v1 = vsel %vm1899_vm13, %v2693_v18, %v2689_v12  ;;  %v3206_v18 = vld [vmem:[%s6418_s3 + $0x60] sm:$0xff]  ;;  %v3208_v12 = vld [vmem:[%s6418_s3 + $0x70] sm:$0xff] }
 0x282   : > { %v1355_v48 = vpop.xlane.xlu0 %1354  ;;  %v2930_v22 = vrot.slane %v1406_v26, %v5756_v28  ;;  %v2994_v26 = vrot.slane %v6255_v27, %v5342_v10 }
 0x283   : > { %v2846_v6 = vrot.slane %v1355_v48, %v5619_v2 }
 0x285   : > { %v6269_v33 = vpop.xlane.xlu1 %1498 }
 0x286   : > { %v6271_v56 = vpop.xlane.xlu0 %1447 }
 0x287   : > { %v2999_v48 = vrot.slane %v6271_v56, %v5482_v62  ;;  %v2995_v62 = vsel %vm1878_vm10, %v2994_v26, %v6245_v23 }
 0x289   : > { %v1265_v36 = vpop.xlane.xlu1 %1264  ;;  %v3000_v63 = vsel %vm1885_vm11, %v2999_v48, %v2995_v62 }
 0x28a   : > { %v1172_v60 = vpop.xlane.xlu0 %1171  ;;  %v2698_v7 = vrot.slane %v1265_v36, %v5886_v16  ;;  %v2847_v36 = vsel %vm1892_vm12, %v2846_v6, %v2842_v11 }
 0x28b   : > { %v2545_v5 = vrot.slane %v1172_v60, %v6076_v30  ;;  %v3083_v60 = vrot.slane %v6269_v33, %v5619_v2 }
 0x28c   : > { %v2699_v41 = vsel %vm1906_vm14, %v2698_v7, %v2694_v1 }
 0x28d   : > { %v2546_v25 = vsel %vm1913_vm15, %v2545_v5, %v2541_v49  ;;  %v1358_v58 = vpop.xlane.xlu1 %1357 }
 0x28e   : > { %v3107_v24 = vsel %vm3106_vm3, %v2546_v25, %v3105_v34  ;;  %v1316_v42 = vpop.xlane.xlu0 %1315  ;;  %v2931_v34 = vsel %vm1899_vm13, %v2930_v22, %v2926_v8  ;;  %v3369_v22 = vld [vmem:[%s6417_s2] ss:$0 sm:$0xff] }
 0x28f   : > { %v2782_v35 = vrot.slane %v1316_v42, %v6076_v30 }
 0x291   : > { %v2783_v37 = vsel %vm1913_vm15, %v2782_v35, %v2778_v51  ;;  %v1451_v4 = vpop.xlane.xlu1 %1450 }
 0x292   : > { %v1409_v54 = vpop.xlane.xlu0 %1408  ;;  %v3118_v61 = vsel %vm3108_vm4, %v2783_v37, %v3117_v29  ;;  %v2851_v29 = vrot.slane %v1358_v58, %v5756_v28  ;;  %v3004_v59 = vrot.slane %v1451_v4, %v5619_v2  ;;  %v3079_v2 = vsel %vm1885_vm11, %v3078_v38, %v6242_v21 }
 0x293   : > { %v2935_v50 = vrot.slane %v1409_v54, %v5886_v16 }
 0x294   : > { %v2852_v27 = vsel %vm1899_vm13, %v2851_v29, %v2847_v36 }
 0x295   : > { %v1268_v3 = vpop.xlane.xlu1 %1267  ;;  %v2936_v13 = vsel %vm1906_vm14, %v2935_v50, %v2931_v34 }
 0x296   : > { %v1502_v44 = vpop.xlane.xlu0 %1501  ;;  %v2703_v0 = vrot.slane %v1268_v3, %v6076_v30  ;;  %v4156_v3 = vpack.c.bf16 %v3209_v46, %v3208_v12 }
 0x297   : > { %v3088_v5 = vrot.slane %v1502_v44, %v5756_v28  ;;  %v4266_v44 = vmov 0.0  }
 0x298   : > { %v2704_v39 = vsel %vm1913_vm15, %v2703_v0, %v2699_v41  ;;  %4099 = vmatprep.mubr.msk.f32.mxu1 %vm4265_vm7, %v4266_v44 }
 0x299   : > { %v1412_v31 = vpop.xlane.xlu1 %1411  ;;  %v3109_v45 = vsel %vm3108_vm4, %v2704_v39, %v3107_v24  ;;  %v3005_v24 = vsel %vm1892_vm12, %v3004_v59, %v3000_v63  ;;  %v3370_v39 = vld [vmem:[%s6419_s4] ss:$0 sm:$0xff] }
 0x29a   : > { %v1361_v19 = vpop.xlane.xlu0 %1360  ;;  %v2940_v57 = vrot.slane %v1412_v31, %v6076_v30 }
 0x29b   : > { %v2856_v40 = vrot.slane %v1361_v19, %v5886_v16 }
 0x29c   : > { %v2941_v47 = vsel %vm1913_vm15, %v2940_v57, %v2936_v13 }
 0x29d   : > { %v1505_v55 = vpop.xlane.xlu1 %1504  ;;  %v3119_v17 = vsel %vm3110_vm5, %v2941_v47, %v3118_v61  ;;  %v2857_v56 = vsel %vm1906_vm14, %v2856_v40, %v2852_v27 }
 0x29e   : > { %v1454_v53 = vpop.xlane.xlu0 %1453  ;;  %v3093_v49 = vrot.slane %v1505_v55, %v5886_v16 }
 0x29f   : > { %v3009_v15 = vrot.slane %v1454_v53, %v5756_v28  ;;  %v3084_v28 = vsel %vm1892_vm12, %v3083_v60, %v3079_v2 }
 0x2a0   : > { %v3089_v9 = vsel %vm1899_vm13, %v3088_v5, %v3084_v28 }
 0x2a1   : > { %v1457_v43 = vpop.xlane.xlu1 %1456  ;;  %v3094_v37 = vsel %vm1906_vm14, %v3093_v49, %v3089_v9 }
 0x2a2   : > { %v1364_v10 = vpop.xlane.xlu0 %1363  ;;  %v3014_v33 = vrot.slane %v1457_v43, %v5886_v16  ;;  %v3010_v16 = vsel %vm1899_vm13, %v3009_v15, %v3005_v24 }
 0x2a3   : > { %v2861_v32 = vrot.slane %v1364_v10, %v6076_v30 }
 0x2a4   : > { %v3015_v51 = vsel %vm1906_vm14, %v3014_v33, %v3010_v16 }
 0x2a5   : > { %v2862_v25 = vsel %vm1913_vm15, %v2861_v32, %v2857_v56  ;;  %v1460_v58 = vpop.xlane.xlu1 %1459 }
 0x2a6   : > { %v1508_v42 = vpop.xlane.xlu0 %1507  ;;  %v3111_v23 = vsel %vm3110_vm5, %v2862_v25, %v3109_v45  ;;  %v3019_v35 = vrot.slane %v1460_v58, %v6076_v30 }
 0x2a7   : > { %v3098_v21 = vrot.slane %v1508_v42, %v6076_v30  ;;  %v3207_v30 = vld [vmem:[%s6418_s3 + $0x68] sm:$0xff] }
 0x2a8   : > { %v3020_v4 = vsel %vm1913_vm15, %v3019_v35, %v3015_v51  ;;  %v4153_v7 = vpack.c.bf16 %v3207_v30, %v3206_v18 }
 0x2a9   : > { %v3099_v52 = vsel %vm1913_vm15, %v3098_v21, %v3094_v37  ;;  %v3113_v61 = vsel %vm3112_vm6, %v3020_v4, %v3111_v23 }
 0x2aa   : > { %v3120_v54 = vsel %vm3112_vm6, %v3099_v52, %v3119_v17  ;;  %4154 = vmatpush3.bf16.msra.mxu1 %v4153_v7 }
 0x2ab   : > { %3187 = vmatprep.mubr.f32.mxu0 %v3120_v54  ;;  %4155 = vmatprep.subr.bf16.mxu1 %v4264_v14 }
 0x2ac   : > { %3188 = vmatmul.mubr.f32.vlgmr.msra.gmra.mrb[0].mxu0 %v3113_v61 }
 0x2ae   : > { %4157 = vmatpush3.bf16.msra.mxu1 %v4156_v3 }
 0x37f   : > { %v4047_v1 = vpop.f32.mrb[0].mxu0 }
 0x380   : > { %v4048_v14 = vpop.f32.mrb[1].mxu0 }
 0x381   : > { %v4049_v0 = vadd.f32 %v4048_v14, %v4047_v1 }
 0x383   : > { %v3190_v41 = vadd.f32 %v4049_v0, %v3369_v22 }
 0x385   : > { %v3193_v50 = vmax.f32 %v3190_v41, 0.0 }
 0x387   : > { %4100 = vmatmul.mubr.f32.vlgmr.msra.gmra.mrb[0].mxu1 %v3193_v50 }
 0x45a   : > { %v3283_v8 = vpop.f32.mrb[0].mxu1 }
 0x45b   : > { %v3284_v31 = vadd.f32 %v3370_v39, %v3283_v8  ;;  %v4101_v19 = vpop.f32.mrb[1].mxu1 }
 0x45d   : > { %3287 = vst [vmem:[%s220_s17] sm:$0xff] %v3284_v31 }
 0x45e   : > { %4213 = shalt.err (!%p4210_p3)
}
 0x45f   : > { %s4214_s10 = scalar_lea.hbm %s6373_s30, 128  ;;  %s4218_s13 = scalar_lea.hbm %s6420_s5, 256 }
 0x460   : > { %p4215_p4 = scmp.ne.s32.totalorder %s6373_s30, %s4214_s10  ;;  %p4219_p9 = scmp.lt.u32.totalorder %s6373_s30, %s6420_s5 }
 0x461   : > { %p4220_p10 = scmp.lt.u32.totalorder %s4218_s13, %s4214_s10  ;;  %p4222_p12 = scmp.lt.u32.totalorder %s4214_s10, %s6373_s30 }
 0x462   : > { %p4216_p7 = pnand %p4215_p4, %p4336_p5 }
 0x463   : > { %p4221_p11 = por %p4220_p10, %p4219_p9 }
 0x464   : > { %p4217_p8 = pneg %p4216_p7 }
 0x465   : > { %p4223_p13 = por %p4222_p12, %p4221_p11 }
 0x467   : > { %p4224_p0 = pnand %p4223_p13, %p4217_p8 }
 0x469   : > { %4227 = shalt.err (!%p4224_p0)
}
 0x46a   : > { %4158 = dma.vmem_to_hbm [thread:$0]  (%p4336_p5), %s6375_s23, 128, %s6373_s30, %s3289_s6  }
 0x46b PF: > { %p4164_p1 = scmp.ge.s32.totalorder %s4262_s21, 2  ;;  %s3314_s16 = sand.u32 1, %s4250_s18  }
 0x46c   : > { %s3315_s17 = scalar_lea.sflag [#allocation3], %s3314_s16 }
 0x46d   : > { %p4161_p2 = pnand %p4164_p1, %p4340_p6 }
 0x46f   : > { %4245 = dma.done.wait (!%p4161_p2), %s3315_s17, 128  }
 0x470   : > { %4247 = vsyncadd (!%p4161_p2), %s3315_s17, 4294967168  ;;  %p15_p3 = scmp.ge.s32.totalorder %s4323_s24, 4   ;;  %s6423_s18 = smov %s4254_s19 }
 0x471   : > { %s6424_s19 = smov %s4258_s20  ;;  %s6425_s20 = smov %s4334_s27 }
 0x472   : > { %s6426_s21 = smov %s4323_s24  ;;  %17 = sbr.rel (!%p15_p3) target bundleno = 3 (0x3), region = 75 }
 0x479   :  { %3320 = vsyncpa [#allocation3], 1 }
 0x47a   :  { %3322 = vsyncpa [#allocation3 + $0x1], 1 }

</bundles_post_ra>
